<compile_context>
chip_gen: v7x
topology: tpu7x:2x2x1
jax: 0.10.0
libtpu: 0.0.40
codegen_flags: <defaults>
</compile_context>

<pallas_src>
import functools

import jax
import jax.numpy as jnp
from jax.experimental import pallas as pl


# --------------------------- model configuration ----------------------------

N_MELS = 8
T_IN = 16
D_MODEL = 32
N_HEADS = 4
HEAD_DIM = D_MODEL // N_HEADS
FFN_DIM = 64
N_LAYERS = 2
LN_EPS = 1e-5


# ----------------------------- in-kernel helpers -----------------------------

def _gelu(x):
    # TODO(synk): HF Whisper uses exact erf-GELU; tanh-approx GELU is used to guarantee
    # Mosaic lowering (difference ~1e-3).
    return jax.nn.gelu(x, approximate=True)


def _layernorm(x, g, b, eps=LN_EPS):
    mu = jnp.mean(x, axis=-1, keepdims=True)
    xc = x - mu
    var = jnp.mean(xc * xc, axis=-1, keepdims=True)
    return xc * jax.lax.rsqrt(var + eps) * g + b


def _softmax_rows(s):
    s = s - jnp.max(s, axis=-1, keepdims=True)
    p = jnp.exp(s)
    return p * pl.reciprocal(jnp.sum(p, axis=-1, keepdims=True), approx=True)


# ------------------------- fused whole-encoder kernel -------------------------

def _encoder_kernel(cols1_ref, w1_ref, b1_ref,
                    sel_ref, w2cat_ref, b2_ref, pos_ref,
                    ln1_g_ref, ln1_b_ref, wqkv_ref, bqkv_ref, wo_ref, bo_ref,
                    ln2_g_ref, ln2_b_ref, wf1_ref, bf1_ref, wf2_ref, bf2_ref,
                    encg_ref, encb_ref, spg_ref, spb_ref,
                    o_ref, *, n_layers, n_heads, head_dim, batch, t2):
    f32 = jnp.float32
    d = n_heads * head_dim

    # ---- conv1 (k=3, s=1, p=1) + GELU: one im2col matmul ----
    h1 = _gelu(jnp.dot(cols1_ref[...], w1_ref[...], preferred_element_type=f32)
               + b1_ref[...])                                            # (B*T, D)

    # ---- conv2 (k=3, s=2, p=1) + GELU ----
    # Fused tap weights: one lane-dense (B*T, 3D) matmul, then three constant stride-2
    # tap-selection matmuls accumulate the strided result (sel is built once at prep time).
    h1w = jnp.dot(h1, w2cat_ref[...], preferred_element_type=f32)       # (B*T, 3D)
    acc = jnp.zeros((batch * t2, d), f32)
    for k in range(3):
        acc = acc + jnp.dot(sel_ref[k], h1w[:, k * d:(k + 1) * d],
                            preferred_element_type=f32)                  # (B*T2, D)
    x = _gelu(acc + b2_ref[...]) + pos_ref[...]                          # (B*T2, D)

    def split_heads(mat):
        # (B*T2, D) -> (H*B, T2, hd); leading index = h * batch + b.
        return jnp.concatenate(
            [mat[:, h * head_dim:(h + 1) * head_dim].reshape(batch, t2, head_dim)
             for h in range(n_heads)], axis=0)

    def merge_heads(mat):
        # (H*B, T2, hd) -> (B*T2, D)
        return jnp.concatenate(
            [mat[h * batch:(h + 1) * batch].reshape(batch * t2, head_dim)
             for h in range(n_heads)], axis=1)

    for l in range(n_layers):
        # ----- self-attention block (pre-LN) -----
        res = x
        y = _layernorm(x, ln1_g_ref[l], ln1_b_ref[l])
        # fused QKV projection; head_dim**-0.5 scaling folded into wq/bq at prepare time
        qkv = jnp.dot(y, wqkv_ref[l], preferred_element_type=f32) + bqkv_ref[l]  # (B*T2, 3D)
        q = split_heads(qkv[:, 0 * d:1 * d])                             # (H*B, T2, hd)
        kk = split_heads(qkv[:, 1 * d:2 * d])
        v = split_heads(qkv[:, 2 * d:3 * d])

        s = jnp.einsum('bqd,bkd->bqk', q, kk,
                       preferred_element_type=f32)                       # (H*B, T2, T2)
        p = _softmax_rows(s)                       # one softmax pass over all heads
        o = jnp.einsum('bqk,bkd->bqd', p, v,
                       preferred_element_type=f32)                       # (H*B, T2, hd)
        attn = merge_heads(o)                                            # (B*T2, D)

        x = jnp.dot(attn, wo_ref[l], preferred_element_type=f32) + bo_ref[l] + res

        # ----- MLP block (pre-LN) -----
        res = x
        y = _layernorm(x, ln2_g_ref[l], ln2_b_ref[l])
        y = _gelu(jnp.dot(y, wf1_ref[l], preferred_element_type=f32) + bf1_ref[l])
        x = jnp.dot(y, wf2_ref[l], preferred_element_type=f32) + bf2_ref[l] + res

    # Whisper encoder final LayerNorm, then the module's extra ln_speech LayerNorm.
    x = _layernorm(x, encg_ref[...], encb_ref[...])
    x = _layernorm(x, spg_ref[...], spb_ref[...])
    o_ref[...] = x.astype(o_ref.dtype)


# --------------------------------- glue ops ----------------------------------

def sinusoids(length, channels):
    """Whisper sinusoidal positional embeddings, (length, channels)."""
    half = channels // 2
    log_inc = jnp.log(10000.0) / (half - 1)
    inv = jnp.exp(-log_inc * jnp.arange(half, dtype=jnp.float32))
    t = jnp.arange(length, dtype=jnp.float32)[:, None] * inv[None, :]
    return jnp.concatenate([jnp.sin(t), jnp.cos(t)], axis=1)


def _conv2_tap_selectors(B, T, T2, dtype=jnp.float32):
    """sel[k] @ h1 picks (per batch block) rows (2*t - 1 + k) of the conv1 output,
    with zero rows when out of range — i.e. the stride-2, pad-1, k=3 im2col taps."""
    ks = jnp.arange(3)[:, None]
    ts = jnp.arange(T2)[None, :]
    src = 2 * ts - 1 + ks                                              # (3, T2)
    valid = (src >= 0) & (src < T)
    onehot = ((src[..., None] == jnp.arange(T)[None, None, :])
              & valid[..., None]).astype(dtype)                        # (3, T2, T)
    eye_b = jnp.eye(B, dtype=dtype)
    return jnp.einsum("ktu,bc->kbtcu", onehot, eye_b).reshape(3, B * T2, B * T)


# --------------------------- parameter construction ---------------------------

def init_params():
    """Deterministic synthetic parameters (linear weights stored as (in, out))."""
    key = jax.random.PRNGKey(0)
    cnt = [0]

    def nrm(shape, std=0.02):
        cnt[0] += 1
        return std * jax.random.normal(jax.random.fold_in(key, cnt[0]), shape, jnp.float32)

    p = {
        "conv1_w": nrm((D_MODEL, N_MELS, 3)),
        "conv1_b": jnp.zeros((D_MODEL,), jnp.float32),
        "conv2_w": nrm((D_MODEL, D_MODEL, 3)),
        "conv2_b": jnp.zeros((D_MODEL,), jnp.float32),
        "enc_ln_g": jnp.ones((D_MODEL,), jnp.float32),
        "enc_ln_b": jnp.zeros((D_MODEL,), jnp.float32),
        "ln_speech_g": jnp.ones((D_MODEL,), jnp.float32),
        "ln_speech_b": jnp.zeros((D_MODEL,), jnp.float32),
        "layers": [],
    }
    for _ in range(N_LAYERS):
        p["layers"].append({
            "ln1_g": jnp.ones((D_MODEL,), jnp.float32),
            "ln1_b": jnp.zeros((D_MODEL,), jnp.float32),
            "wq": nrm((D_MODEL, D_MODEL)), "bq": jnp.zeros((D_MODEL,), jnp.float32),
            "wk": nrm((D_MODEL, D_MODEL)), "bk": jnp.zeros((D_MODEL,), jnp.float32),  # k_proj bias=False -> 0
            "wv": nrm((D_MODEL, D_MODEL)), "bv": jnp.zeros((D_MODEL,), jnp.float32),
            "wo": nrm((D_MODEL, D_MODEL)), "bo": jnp.zeros((D_MODEL,), jnp.float32),
            "ln2_g": jnp.ones((D_MODEL,), jnp.float32),
            "ln2_b": jnp.zeros((D_MODEL,), jnp.float32),
            "w1": nrm((D_MODEL, FFN_DIM)), "b1": jnp.zeros((FFN_DIM,), jnp.float32),
            "w2": nrm((FFN_DIM, D_MODEL)), "b2": jnp.zeros((D_MODEL,), jnp.float32),
        })
    return p


# --------------------- one-time parameter preparation (hoisted) ---------------------

def prepare_params(params, batch, t_in):
    """Run ONCE: pack/stack all weights and constants for the fused kernel.

    Everything here is data-independent; doing it eagerly keeps these ~20 small
    repack/concat ops (and the constant-selector / sinusoid builds) out of the
    per-call forward graph entirely.
    """
    B, T = batch, t_in
    T2 = (T + 2 * 1 - 3) // 2 + 1   # conv2: k=3, s=2, p=1
    D = D_MODEL
    layers = params["layers"]
    L = len(layers)
    scaling = float(HEAD_DIM) ** -0.5

    def stack(key, shape=None):
        a = jnp.stack([lp[key] for lp in layers])
        return a if shape is None else a.reshape(shape)

    prepped = {
        # conv stem
        "w1mat": params["conv1_w"].reshape(D, N_MELS * 3).T,                          # (Cin*3, D)
        "b1": params["conv1_b"].reshape(1, D),
        "sel": _conv2_tap_selectors(B, T, T2),                                        # (3, B*T2, B*T)
        "w2cat": jnp.concatenate([params["conv2_w"][:, :, k].T for k in range(3)],
                                 axis=1),                                             # (D, 3D)
        "b2": params["conv2_b"].reshape(1, D),
        "pos": jnp.tile(sinusoids(T2, D), (B, 1)),                                    # (B*T2, D)
        # transformer layers (fused QKV; head_dim**-0.5 folded into wq/bq)
        "ln1_g": stack("ln1_g", (L, 1, D)), "ln1_b": stack("ln1_b", (L, 1, D)),
        "wqkv": jnp.stack([jnp.concatenate([lp["wq"] * scaling, lp["wk"], lp["wv"]],
                                           axis=1) for lp in layers]),                # (L, D, 3D)
        "bqkv": jnp.stack([jnp.concatenate([lp["bq"] * scaling, lp["bk"], lp["bv"]])
                           for lp in layers]).reshape(L, 1, 3 * D),
        "wo": stack("wo"), "bo": stack("bo", (L, 1, D)),
        "ln2_g": stack("ln2_g", (L, 1, D)), "ln2_b": stack("ln2_b", (L, 1, D)),
        "wf1": stack("w1"), "bf1": stack("b1", (L, 1, FFN_DIM)),
        "wf2": stack("w2"), "bf2": stack("b2", (L, 1, D)),
        # final norms
        "enc_g": params["enc_ln_g"].reshape(1, D), "enc_b": params["enc_ln_b"].reshape(1, D),
        "sp_g": params["ln_speech_g"].reshape(1, D), "sp_b": params["ln_speech_b"].reshape(1, D),
    }
    return jax.tree_util.tree_map(jnp.asarray, prepped)


# ------------------------------- forward pass ---------------------------------

@jax.jit
def hf_speech_backbone_forward(mel, prepped):
    """mel: (B, n_mels, T) float32 -> (B, T//2, d_model) float32 features."""
    B, n_mels, T = mel.shape
    T2 = (T + 2 * 1 - 3) // 2 + 1  # conv2: k=3, s=2, p=1
    D = D_MODEL
    L = prepped["wqkv"].shape[0]

    # --- conv1 im2col (the only data-dependent glue; conv matmuls run in-kernel) ---
    melp = jnp.pad(mel, ((0, 0), (0, 0), (1, 1)))                                 # (B, Cin, T+2)
    cols1 = jnp.stack([melp[:, :, k:k + T] for k in range(3)], axis=-1)           # (B, Cin, T, 3)
    cols1 = jnp.transpose(cols1, (0, 2, 1, 3)).reshape(B * T, n_mels * 3)         # (B*T, Cin*3)

    kern = functools.partial(_encoder_kernel, n_layers=L, n_heads=N_HEADS,
                             head_dim=HEAD_DIM, batch=B, t2=T2)
    out = pl.pallas_call(
        kern,
        out_shape=jax.ShapeDtypeStruct((B * T2, D), jnp.float32),
    )(
        cols1, prepped["w1mat"], prepped["b1"],
        prepped["sel"], prepped["w2cat"], prepped["b2"], prepped["pos"],
        prepped["ln1_g"], prepped["ln1_b"], prepped["wqkv"], prepped["bqkv"],
        prepped["wo"], prepped["bo"],
        prepped["ln2_g"], prepped["ln2_b"],
        prepped["wf1"], prepped["bf1"], prepped["wf2"], prepped["bf2"],
        prepped["enc_g"], prepped["enc_b"], prepped["sp_g"], prepped["sp_b"],
    )
    return out.reshape(B, T2, D)


# ------------------------------------ main -------------------------------------

if __name__ == "__main__":
    B = 2
    params = init_params()
    prepped = prepare_params(params, B, T_IN)          # hoisted: runs once, not per call
    jax.block_until_ready(prepped)

    mel = jax.random.normal(jax.random.PRNGKey(0), (B, N_MELS, T_IN), jnp.float32)  # (B, n_mels, T)
    out = hf_speech_backbone_forward(mel, prepped)
    out = jax.block_until_ready(out)
    assert out.shape == (B, T_IN // 2, D_MODEL)
    assert bool(jnp.all(jnp.isfinite(out)))
    print("KERNEL_OK")
</pallas_src>

<mosaic_0001>
module attributes {stable_mosaic.version = 11 : i64} {
  func.func @_encoder_kernel(%arg0: memref<32x24xf32, #tpu.memory_space<vmem>>, %arg1: memref<24x32xf32, #tpu.memory_space<vmem>>, %arg2: memref<1x32xf32, #tpu.memory_space<vmem>>, %arg3: memref<3x16x32xf32, #tpu.memory_space<vmem>>, %arg4: memref<32x96xf32, #tpu.memory_space<vmem>>, %arg5: memref<1x32xf32, #tpu.memory_space<vmem>>, %arg6: memref<16x32xf32, #tpu.memory_space<vmem>>, %arg7: memref<2x1x32xf32, #tpu.memory_space<vmem>>, %arg8: memref<2x1x32xf32, #tpu.memory_space<vmem>>, %arg9: memref<2x32x96xf32, #tpu.memory_space<vmem>>, %arg10: memref<2x1x96xf32, #tpu.memory_space<vmem>>, %arg11: memref<2x32x32xf32, #tpu.memory_space<vmem>>, %arg12: memref<2x1x32xf32, #tpu.memory_space<vmem>>, %arg13: memref<2x1x32xf32, #tpu.memory_space<vmem>>, %arg14: memref<2x1x32xf32, #tpu.memory_space<vmem>>, %arg15: memref<2x32x64xf32, #tpu.memory_space<vmem>>, %arg16: memref<2x1x64xf32, #tpu.memory_space<vmem>>, %arg17: memref<2x64x32xf32, #tpu.memory_space<vmem>>, %arg18: memref<2x1x32xf32, #tpu.memory_space<vmem>>, %arg19: memref<1x32xf32, #tpu.memory_space<vmem>>, %arg20: memref<1x32xf32, #tpu.memory_space<vmem>>, %arg21: memref<1x32xf32, #tpu.memory_space<vmem>>, %arg22: memref<1x32xf32, #tpu.memory_space<vmem>>, %arg23: memref<16x32xf32, #tpu.memory_space<vmem>>) attributes {dimension_semantics = [], scalar_prefetch = 0 : i64, scratch_operands = 0 : i64, tpu.core_type = #tpu.core_type<tc>} {
    %c0 = arith.constant 0 : index
    %c0_0 = arith.constant 0 : index
    %0 = vector.load %arg0[%c0, %c0_0] : memref<32x24xf32, #tpu.memory_space<vmem>>, vector<32x24xf32>
    %c0_1 = arith.constant 0 : index
    %c0_2 = arith.constant 0 : index
    %1 = vector.load %arg1[%c0_1, %c0_2] : memref<24x32xf32, #tpu.memory_space<vmem>>, vector<24x32xf32>
    %cst = arith.constant dense<0.000000e+00> : vector<32x32xf32>
    %2 = tpu.matmul %0, %1, %cst {dimension_numbers = #tpu.dot_dimension_numbers<[1], [0], [0], [1], [0, 0, 1, 1], [], []>} : vector<32x24xf32>, vector<24x32xf32>, vector<32x32xf32> -> vector<32x32xf32>
    %c0_3 = arith.constant 0 : index
    %c0_4 = arith.constant 0 : index
    %3 = vector.load %arg2[%c0_3, %c0_4] : memref<1x32xf32, #tpu.memory_space<vmem>>, vector<1x32xf32>
    %4 = vector.broadcast %3 : vector<1x32xf32> to vector<32x32xf32>
    %5 = arith.addf %2, %4 : vector<32x32xf32>
    %6 = arith.mulf %5, %5 : vector<32x32xf32>
    %7 = arith.mulf %5, %6 : vector<32x32xf32>
    %cst_5 = arith.constant 4.471500e-02 : f32
    %8 = vector.broadcast %cst_5 : f32 to vector<32x32xf32>
    %9 = arith.mulf %8, %7 : vector<32x32xf32>
    %10 = arith.addf %5, %9 : vector<32x32xf32>
    %cst_6 = arith.constant 0.797884583 : f32
    %11 = vector.broadcast %cst_6 : f32 to vector<32x32xf32>
    %12 = arith.mulf %11, %10 : vector<32x32xf32>
    %13 = math.tanh %12 : vector<32x32xf32>
    %cst_7 = arith.constant 1.000000e+00 : f32
    %14 = vector.broadcast %cst_7 : f32 to vector<32x32xf32>
    %15 = arith.addf %14, %13 : vector<32x32xf32>
    %cst_8 = arith.constant 5.000000e-01 : f32
    %16 = vector.broadcast %cst_8 : f32 to vector<32x32xf32>
    %17 = arith.mulf %16, %15 : vector<32x32xf32>
    %18 = arith.mulf %5, %17 : vector<32x32xf32>
    %c0_9 = arith.constant 0 : index
    %c0_10 = arith.constant 0 : index
    %19 = vector.load %arg4[%c0_9, %c0_10] : memref<32x96xf32, #tpu.memory_space<vmem>>, vector<32x96xf32>
    %cst_11 = arith.constant dense<0.000000e+00> : vector<32x96xf32>
    %20 = tpu.matmul %18, %19, %cst_11 {dimension_numbers = #tpu.dot_dimension_numbers<[1], [0], [0], [1], [0, 0, 1, 1], [], []>} : vector<32x32xf32>, vector<32x96xf32>, vector<32x96xf32> -> vector<32x96xf32>
    %cst_12 = arith.constant 0.000000e+00 : f32
    %21 = vector.broadcast %cst_12 : f32 to vector<16x32xf32>
    %c0_13 = arith.constant 0 : index
    %c0_14 = arith.constant 0 : index
    %c0_15 = arith.constant 0 : index
    %22 = vector.load %arg3[%c0_13, %c0_14, %c0_15] : memref<3x16x32xf32, #tpu.memory_space<vmem>>, vector<1x16x32xf32>
    %23 = vector.shape_cast %22 : vector<1x16x32xf32> to vector<16x32xf32>
    %24 = vector.extract_strided_slice %20 {offsets = [0, 0], sizes = [32, 32], strides = [1, 1]} : vector<32x96xf32> to vector<32x32xf32>
    %cst_16 = arith.constant dense<0.000000e+00> : vector<16x32xf32>
    %25 = tpu.matmul %23, %24, %cst_16 {dimension_numbers = #tpu.dot_dimension_numbers<[1], [0], [0], [1], [0, 0, 1, 1], [], []>} : vector<16x32xf32>, vector<32x32xf32>, vector<16x32xf32> -> vector<16x32xf32>
    %26 = arith.addf %21, %25 : vector<16x32xf32>
    %c1 = arith.constant 1 : index
    %c0_17 = arith.constant 0 : index
    %c0_18 = arith.constant 0 : index
    %27 = vector.load %arg3[%c1, %c0_17, %c0_18] : memref<3x16x32xf32, #tpu.memory_space<vmem>>, vector<1x16x32xf32>
    %28 = vector.shape_cast %27 : vector<1x16x32xf32> to vector<16x32xf32>
    %29 = vector.extract_strided_slice %20 {offsets = [0, 32], sizes = [32, 32], strides = [1, 1]} : vector<32x96xf32> to vector<32x32xf32>
    %cst_19 = arith.constant dense<0.000000e+00> : vector<16x32xf32>
    %30 = tpu.matmul %28, %29, %cst_19 {dimension_numbers = #tpu.dot_dimension_numbers<[1], [0], [0], [1], [0, 0, 1, 1], [], []>} : vector<16x32xf32>, vector<32x32xf32>, vector<16x32xf32> -> vector<16x32xf32>
    %31 = arith.addf %26, %30 : vector<16x32xf32>
    %c2 = arith.constant 2 : index
    %c0_20 = arith.constant 0 : index
    %c0_21 = arith.constant 0 : index
    %32 = vector.load %arg3[%c2, %c0_20, %c0_21] : memref<3x16x32xf32, #tpu.memory_space<vmem>>, vector<1x16x32xf32>
    %33 = vector.shape_cast %32 : vector<1x16x32xf32> to vector<16x32xf32>
    %34 = vector.extract_strided_slice %20 {offsets = [0, 64], sizes = [32, 32], strides = [1, 1]} : vector<32x96xf32> to vector<32x32xf32>
    %cst_22 = arith.constant dense<0.000000e+00> : vector<16x32xf32>
    %35 = tpu.matmul %33, %34, %cst_22 {dimension_numbers = #tpu.dot_dimension_numbers<[1], [0], [0], [1], [0, 0, 1, 1], [], []>} : vector<16x32xf32>, vector<32x32xf32>, vector<16x32xf32> -> vector<16x32xf32>
    %36 = arith.addf %31, %35 : vector<16x32xf32>
    %c0_23 = arith.constant 0 : index
    %c0_24 = arith.constant 0 : index
    %37 = vector.load %arg5[%c0_23, %c0_24] : memref<1x32xf32, #tpu.memory_space<vmem>>, vector<1x32xf32>
    %38 = vector.broadcast %37 : vector<1x32xf32> to vector<16x32xf32>
    %39 = arith.addf %36, %38 : vector<16x32xf32>
    %40 = arith.mulf %39, %39 : vector<16x32xf32>
    %41 = arith.mulf %39, %40 : vector<16x32xf32>
    %cst_25 = arith.constant 4.471500e-02 : f32
    %42 = vector.broadcast %cst_25 : f32 to vector<16x32xf32>
    %43 = arith.mulf %42, %41 : vector<16x32xf32>
    %44 = arith.addf %39, %43 : vector<16x32xf32>
    %cst_26 = arith.constant 0.797884583 : f32
    %45 = vector.broadcast %cst_26 : f32 to vector<16x32xf32>
    %46 = arith.mulf %45, %44 : vector<16x32xf32>
    %47 = math.tanh %46 : vector<16x32xf32>
    %cst_27 = arith.constant 1.000000e+00 : f32
    %48 = vector.broadcast %cst_27 : f32 to vector<16x32xf32>
    %49 = arith.addf %48, %47 : vector<16x32xf32>
    %cst_28 = arith.constant 5.000000e-01 : f32
    %50 = vector.broadcast %cst_28 : f32 to vector<16x32xf32>
    %51 = arith.mulf %50, %49 : vector<16x32xf32>
    %52 = arith.mulf %39, %51 : vector<16x32xf32>
    %c0_29 = arith.constant 0 : index
    %c0_30 = arith.constant 0 : index
    %53 = vector.load %arg6[%c0_29, %c0_30] : memref<16x32xf32, #tpu.memory_space<vmem>>, vector<16x32xf32>
    %54 = arith.addf %52, %53 : vector<16x32xf32>
    %c0_31 = arith.constant 0 : index
    %c0_32 = arith.constant 0 : index
    %c0_33 = arith.constant 0 : index
    %55 = vector.load %arg7[%c0_31, %c0_32, %c0_33] : memref<2x1x32xf32, #tpu.memory_space<vmem>>, vector<1x1x32xf32>
    %56 = vector.shape_cast %55 : vector<1x1x32xf32> to vector<1x32xf32>
    %c0_34 = arith.constant 0 : index
    %c0_35 = arith.constant 0 : index
    %c0_36 = arith.constant 0 : index
    %57 = vector.load %arg8[%c0_34, %c0_35, %c0_36] : memref<2x1x32xf32, #tpu.memory_space<vmem>>, vector<1x1x32xf32>
    %58 = vector.shape_cast %57 : vector<1x1x32xf32> to vector<1x32xf32>
    %cst_37 = arith.constant dense<0.000000e+00> : vector<16xf32>
    %59 = vector.multi_reduction <add>, %54, %cst_37 [1] : vector<16x32xf32> to vector<16xf32>
    %60 = vector.shape_cast %59 : vector<16xf32> to vector<16x1xf32>
    %cst_38 = arith.constant 3.200000e+01 : f32
    %61 = vector.broadcast %cst_38 : f32 to vector<16x1xf32>
    %62 = arith.divf %60, %61 : vector<16x1xf32>
    %63 = vector.broadcast %62 : vector<16x1xf32> to vector<16x32xf32>
    %64 = arith.subf %54, %63 : vector<16x32xf32>
    %65 = arith.mulf %64, %64 : vector<16x32xf32>
    %cst_39 = arith.constant dense<0.000000e+00> : vector<16xf32>
    %66 = vector.multi_reduction <add>, %65, %cst_39 [1] : vector<16x32xf32> to vector<16xf32>
    %67 = vector.shape_cast %66 : vector<16xf32> to vector<16x1xf32>
    %cst_40 = arith.constant 3.200000e+01 : f32
    %68 = vector.broadcast %cst_40 : f32 to vector<16x1xf32>
    %69 = arith.divf %67, %68 : vector<16x1xf32>
    %cst_41 = arith.constant 9.99999974E-6 : f32
    %70 = vector.broadcast %cst_41 : f32 to vector<16x1xf32>
    %71 = arith.addf %69, %70 : vector<16x1xf32>
    %72 = math.rsqrt %71 : vector<16x1xf32>
    %73 = vector.broadcast %72 : vector<16x1xf32> to vector<16x32xf32>
    %74 = arith.mulf %64, %73 : vector<16x32xf32>
    %75 = vector.broadcast %56 : vector<1x32xf32> to vector<16x32xf32>
    %76 = arith.mulf %74, %75 : vector<16x32xf32>
    %77 = vector.broadcast %58 : vector<1x32xf32> to vector<16x32xf32>
    %78 = arith.addf %76, %77 : vector<16x32xf32>
    %c0_42 = arith.constant 0 : index
    %c0_43 = arith.constant 0 : index
    %c0_44 = arith.constant 0 : index
    %79 = vector.load %arg9[%c0_42, %c0_43, %c0_44] : memref<2x32x96xf32, #tpu.memory_space<vmem>>, vector<1x32x96xf32>
    %80 = vector.shape_cast %79 : vector<1x32x96xf32> to vector<32x96xf32>
    %cst_45 = arith.constant dense<0.000000e+00> : vector<16x96xf32>
    %81 = tpu.matmul %78, %80, %cst_45 {dimension_numbers = #tpu.dot_dimension_numbers<[1], [0], [0], [1], [0, 0, 1, 1], [], []>} : vector<16x32xf32>, vector<32x96xf32>, vector<16x96xf32> -> vector<16x96xf32>
    %c0_46 = arith.constant 0 : index
    %c0_47 = arith.constant 0 : index
    %c0_48 = arith.constant 0 : index
    %82 = vector.load %arg10[%c0_46, %c0_47, %c0_48] : memref<2x1x96xf32, #tpu.memory_space<vmem>>, vector<1x1x96xf32>
    %83 = vector.shape_cast %82 : vector<1x1x96xf32> to vector<1x96xf32>
    %84 = vector.broadcast %83 : vector<1x96xf32> to vector<16x96xf32>
    %85 = arith.addf %81, %84 : vector<16x96xf32>
    %86 = vector.extract_strided_slice %85 {offsets = [0, 0], sizes = [16, 32], strides = [1, 1]} : vector<16x96xf32> to vector<16x32xf32>
    %87 = vector.extract_strided_slice %86 {offsets = [0, 0], sizes = [16, 8], strides = [1, 1]} : vector<16x32xf32> to vector<16x8xf32>
    %88 = vector.shape_cast %87 : vector<16x8xf32> to vector<2x8x8xf32>
    %89 = vector.extract_strided_slice %86 {offsets = [0, 8], sizes = [16, 8], strides = [1, 1]} : vector<16x32xf32> to vector<16x8xf32>
    %90 = vector.shape_cast %89 : vector<16x8xf32> to vector<2x8x8xf32>
    %91 = vector.extract_strided_slice %86 {offsets = [0, 16], sizes = [16, 8], strides = [1, 1]} : vector<16x32xf32> to vector<16x8xf32>
    %92 = vector.shape_cast %91 : vector<16x8xf32> to vector<2x8x8xf32>
    %93 = vector.extract_strided_slice %86 {offsets = [0, 24], sizes = [16, 8], strides = [1, 1]} : vector<16x32xf32> to vector<16x8xf32>
    %94 = vector.shape_cast %93 : vector<16x8xf32> to vector<2x8x8xf32>
    %95 = tpu.concatenate %88, %90, %92, %94 in 0 : vector<2x8x8xf32>, vector<2x8x8xf32>, vector<2x8x8xf32>, vector<2x8x8xf32> -> vector<8x8x8xf32>
    %96 = vector.extract_strided_slice %85 {offsets = [0, 32], sizes = [16, 32], strides = [1, 1]} : vector<16x96xf32> to vector<16x32xf32>
    %97 = vector.extract_strided_slice %96 {offsets = [0, 0], sizes = [16, 8], strides = [1, 1]} : vector<16x32xf32> to vector<16x8xf32>
    %98 = vector.shape_cast %97 : vector<16x8xf32> to vector<2x8x8xf32>
    %99 = vector.extract_strided_slice %96 {offsets = [0, 8], sizes = [16, 8], strides = [1, 1]} : vector<16x32xf32> to vector<16x8xf32>
    %100 = vector.shape_cast %99 : vector<16x8xf32> to vector<2x8x8xf32>
    %101 = vector.extract_strided_slice %96 {offsets = [0, 16], sizes = [16, 8], strides = [1, 1]} : vector<16x32xf32> to vector<16x8xf32>
    %102 = vector.shape_cast %101 : vector<16x8xf32> to vector<2x8x8xf32>
    %103 = vector.extract_strided_slice %96 {offsets = [0, 24], sizes = [16, 8], strides = [1, 1]} : vector<16x32xf32> to vector<16x8xf32>
    %104 = vector.shape_cast %103 : vector<16x8xf32> to vector<2x8x8xf32>
    %105 = tpu.concatenate %98, %100, %102, %104 in 0 : vector<2x8x8xf32>, vector<2x8x8xf32>, vector<2x8x8xf32>, vector<2x8x8xf32> -> vector<8x8x8xf32>
    %106 = vector.extract_strided_slice %85 {offsets = [0, 64], sizes = [16, 32], strides = [1, 1]} : vector<16x96xf32> to vector<16x32xf32>
    %107 = vector.extract_strided_slice %106 {offsets = [0, 0], sizes = [16, 8], strides = [1, 1]} : vector<16x32xf32> to vector<16x8xf32>
    %108 = vector.shape_cast %107 : vector<16x8xf32> to vector<2x8x8xf32>
    %109 = vector.extract_strided_slice %106 {offsets = [0, 8], sizes = [16, 8], strides = [1, 1]} : vector<16x32xf32> to vector<16x8xf32>
    %110 = vector.shape_cast %109 : vector<16x8xf32> to vector<2x8x8xf32>
    %111 = vector.extract_strided_slice %106 {offsets = [0, 16], sizes = [16, 8], strides = [1, 1]} : vector<16x32xf32> to vector<16x8xf32>
    %112 = vector.shape_cast %111 : vector<16x8xf32> to vector<2x8x8xf32>
    %113 = vector.extract_strided_slice %106 {offsets = [0, 24], sizes = [16, 8], strides = [1, 1]} : vector<16x32xf32> to vector<16x8xf32>
    %114 = vector.shape_cast %113 : vector<16x8xf32> to vector<2x8x8xf32>
    %115 = tpu.concatenate %108, %110, %112, %114 in 0 : vector<2x8x8xf32>, vector<2x8x8xf32>, vector<2x8x8xf32>, vector<2x8x8xf32> -> vector<8x8x8xf32>
    "tpu.trace_start"() <{level = 10 : i32, message = "bqd,bkd->bqk"}> : () -> ()
    %cst_49 = arith.constant dense<0.000000e+00> : vector<8x8x8xf32>
    %116 = tpu.matmul %95, %105, %cst_49 {dimension_numbers = #tpu.dot_dimension_numbers<[2], [2], [1], [1], [0, 0, 0, 1, 1, 1], [0], [0]>} : vector<8x8x8xf32>, vector<8x8x8xf32>, vector<8x8x8xf32> -> vector<8x8x8xf32>
    "tpu.trace_stop"() : () -> ()
    %cst_50 = arith.constant dense<0xFF800000> : vector<8x8xf32>
    %117 = vector.multi_reduction <maximumf>, %116, %cst_50 [2] : vector<8x8x8xf32> to vector<8x8xf32>
    %118 = vector.shape_cast %117 : vector<8x8xf32> to vector<8x8x1xf32>
    %119 = vector.broadcast %118 : vector<8x8x1xf32> to vector<8x8x8xf32>
    %120 = arith.subf %116, %119 : vector<8x8x8xf32>
    %121 = math.exp %120 : vector<8x8x8xf32>
    %cst_51 = arith.constant dense<0.000000e+00> : vector<8x8xf32>
    %122 = vector.multi_reduction <add>, %121, %cst_51 [2] : vector<8x8x8xf32> to vector<8x8xf32>
    %123 = vector.shape_cast %122 : vector<8x8xf32> to vector<8x8x1xf32>
    %124 = tpu.reciprocal %123 {approx = true} : vector<8x8x1xf32> -> vector<8x8x1xf32>
    %125 = vector.broadcast %124 : vector<8x8x1xf32> to vector<8x8x8xf32>
    %126 = arith.mulf %121, %125 : vector<8x8x8xf32>
    "tpu.trace_start"() <{level = 10 : i32, message = "bqk,bkd->bqd"}> : () -> ()
    %cst_52 = arith.constant dense<0.000000e+00> : vector<8x8x8xf32>
    %127 = tpu.matmul %126, %115, %cst_52 {dimension_numbers = #tpu.dot_dimension_numbers<[2], [1], [1], [2], [0, 0, 0, 1, 1, 2], [0], [0]>} : vector<8x8x8xf32>, vector<8x8x8xf32>, vector<8x8x8xf32> -> vector<8x8x8xf32>
    "tpu.trace_stop"() : () -> ()
    %128 = vector.extract_strided_slice %127 {offsets = [0, 0, 0], sizes = [2, 8, 8], strides = [1, 1, 1]} : vector<8x8x8xf32> to vector<2x8x8xf32>
    %129 = vector.shape_cast %128 : vector<2x8x8xf32> to vector<16x8xf32>
    %130 = vector.extract_strided_slice %127 {offsets = [2, 0, 0], sizes = [2, 8, 8], strides = [1, 1, 1]} : vector<8x8x8xf32> to vector<2x8x8xf32>
    %131 = vector.shape_cast %130 : vector<2x8x8xf32> to vector<16x8xf32>
    %132 = vector.extract_strided_slice %127 {offsets = [4, 0, 0], sizes = [2, 8, 8], strides = [1, 1, 1]} : vector<8x8x8xf32> to vector<2x8x8xf32>
    %133 = vector.shape_cast %132 : vector<2x8x8xf32> to vector<16x8xf32>
    %134 = vector.extract_strided_slice %127 {offsets = [6, 0, 0], sizes = [2, 8, 8], strides = [1, 1, 1]} : vector<8x8x8xf32> to vector<2x8x8xf32>
    %135 = vector.shape_cast %134 : vector<2x8x8xf32> to vector<16x8xf32>
    %136 = tpu.concatenate %129, %131, %133, %135 in 1 : vector<16x8xf32>, vector<16x8xf32>, vector<16x8xf32>, vector<16x8xf32> -> vector<16x32xf32>
    %c0_53 = arith.constant 0 : index
    %c0_54 = arith.constant 0 : index
    %c0_55 = arith.constant 0 : index
    %137 = vector.load %arg11[%c0_53, %c0_54, %c0_55] : memref<2x32x32xf32, #tpu.memory_space<vmem>>, vector<1x32x32xf32>
    %138 = vector.shape_cast %137 : vector<1x32x32xf32> to vector<32x32xf32>
    %cst_56 = arith.constant dense<0.000000e+00> : vector<16x32xf32>
    %139 = tpu.matmul %136, %138, %cst_56 {dimension_numbers = #tpu.dot_dimension_numbers<[1], [0], [0], [1], [0, 0, 1, 1], [], []>} : vector<16x32xf32>, vector<32x32xf32>, vector<16x32xf32> -> vector<16x32xf32>
    %c0_57 = arith.constant 0 : index
    %c0_58 = arith.constant 0 : index
    %c0_59 = arith.constant 0 : index
    %140 = vector.load %arg12[%c0_57, %c0_58, %c0_59] : memref<2x1x32xf32, #tpu.memory_space<vmem>>, vector<1x1x32xf32>
    %141 = vector.shape_cast %140 : vector<1x1x32xf32> to vector<1x32xf32>
    %142 = vector.broadcast %141 : vector<1x32xf32> to vector<16x32xf32>
    %143 = arith.addf %139, %142 : vector<16x32xf32>
    %144 = arith.addf %143, %54 : vector<16x32xf32>
    %c0_60 = arith.constant 0 : index
    %c0_61 = arith.constant 0 : index
    %c0_62 = arith.constant 0 : index
    %145 = vector.load %arg13[%c0_60, %c0_61, %c0_62] : memref<2x1x32xf32, #tpu.memory_space<vmem>>, vector<1x1x32xf32>
    %146 = vector.shape_cast %145 : vector<1x1x32xf32> to vector<1x32xf32>
    %c0_63 = arith.constant 0 : index
    %c0_64 = arith.constant 0 : index
    %c0_65 = arith.constant 0 : index
    %147 = vector.load %arg14[%c0_63, %c0_64, %c0_65] : memref<2x1x32xf32, #tpu.memory_space<vmem>>, vector<1x1x32xf32>
    %148 = vector.shape_cast %147 : vector<1x1x32xf32> to vector<1x32xf32>
    %cst_66 = arith.constant dense<0.000000e+00> : vector<16xf32>
    %149 = vector.multi_reduction <add>, %144, %cst_66 [1] : vector<16x32xf32> to vector<16xf32>
    %150 = vector.shape_cast %149 : vector<16xf32> to vector<16x1xf32>
    %cst_67 = arith.constant 3.200000e+01 : f32
    %151 = vector.broadcast %cst_67 : f32 to vector<16x1xf32>
    %152 = arith.divf %150, %151 : vector<16x1xf32>
    %153 = vector.broadcast %152 : vector<16x1xf32> to vector<16x32xf32>
    %154 = arith.subf %144, %153 : vector<16x32xf32>
    %155 = arith.mulf %154, %154 : vector<16x32xf32>
    %cst_68 = arith.constant dense<0.000000e+00> : vector<16xf32>
    %156 = vector.multi_reduction <add>, %155, %cst_68 [1] : vector<16x32xf32> to vector<16xf32>
    %157 = vector.shape_cast %156 : vector<16xf32> to vector<16x1xf32>
    %cst_69 = arith.constant 3.200000e+01 : f32
    %158 = vector.broadcast %cst_69 : f32 to vector<16x1xf32>
    %159 = arith.divf %157, %158 : vector<16x1xf32>
    %cst_70 = arith.constant 9.99999974E-6 : f32
    %160 = vector.broadcast %cst_70 : f32 to vector<16x1xf32>
    %161 = arith.addf %159, %160 : vector<16x1xf32>
    %162 = math.rsqrt %161 : vector<16x1xf32>
    %163 = vector.broadcast %162 : vector<16x1xf32> to vector<16x32xf32>
    %164 = arith.mulf %154, %163 : vector<16x32xf32>
    %165 = vector.broadcast %146 : vector<1x32xf32> to vector<16x32xf32>
    %166 = arith.mulf %164, %165 : vector<16x32xf32>
    %167 = vector.broadcast %148 : vector<1x32xf32> to vector<16x32xf32>
    %168 = arith.addf %166, %167 : vector<16x32xf32>
    %c0_71 = arith.constant 0 : index
    %c0_72 = arith.constant 0 : index
    %c0_73 = arith.constant 0 : index
    %169 = vector.load %arg15[%c0_71, %c0_72, %c0_73] : memref<2x32x64xf32, #tpu.memory_space<vmem>>, vector<1x32x64xf32>
    %170 = vector.shape_cast %169 : vector<1x32x64xf32> to vector<32x64xf32>
    %cst_74 = arith.constant dense<0.000000e+00> : vector<16x64xf32>
    %171 = tpu.matmul %168, %170, %cst_74 {dimension_numbers = #tpu.dot_dimension_numbers<[1], [0], [0], [1], [0, 0, 1, 1], [], []>} : vector<16x32xf32>, vector<32x64xf32>, vector<16x64xf32> -> vector<16x64xf32>
    %c0_75 = arith.constant 0 : index
    %c0_76 = arith.constant 0 : index
    %c0_77 = arith.constant 0 : index
    %172 = vector.load %arg16[%c0_75, %c0_76, %c0_77] : memref<2x1x64xf32, #tpu.memory_space<vmem>>, vector<1x1x64xf32>
    %173 = vector.shape_cast %172 : vector<1x1x64xf32> to vector<1x64xf32>
    %174 = vector.broadcast %173 : vector<1x64xf32> to vector<16x64xf32>
    %175 = arith.addf %171, %174 : vector<16x64xf32>
    %176 = arith.mulf %175, %175 : vector<16x64xf32>
    %177 = arith.mulf %175, %176 : vector<16x64xf32>
    %cst_78 = arith.constant 4.471500e-02 : f32
    %178 = vector.broadcast %cst_78 : f32 to vector<16x64xf32>
    %179 = arith.mulf %178, %177 : vector<16x64xf32>
    %180 = arith.addf %175, %179 : vector<16x64xf32>
    %cst_79 = arith.constant 0.797884583 : f32
    %181 = vector.broadcast %cst_79 : f32 to vector<16x64xf32>
    %182 = arith.mulf %181, %180 : vector<16x64xf32>
    %183 = math.tanh %182 : vector<16x64xf32>
    %cst_80 = arith.constant 1.000000e+00 : f32
    %184 = vector.broadcast %cst_80 : f32 to vector<16x64xf32>
    %185 = arith.addf %184, %183 : vector<16x64xf32>
    %cst_81 = arith.constant 5.000000e-01 : f32
    %186 = vector.broadcast %cst_81 : f32 to vector<16x64xf32>
    %187 = arith.mulf %186, %185 : vector<16x64xf32>
    %188 = arith.mulf %175, %187 : vector<16x64xf32>
    %c0_82 = arith.constant 0 : index
    %c0_83 = arith.constant 0 : index
    %c0_84 = arith.constant 0 : index
    %189 = vector.load %arg17[%c0_82, %c0_83, %c0_84] : memref<2x64x32xf32, #tpu.memory_space<vmem>>, vector<1x64x32xf32>
    %190 = vector.shape_cast %189 : vector<1x64x32xf32> to vector<64x32xf32>
    %cst_85 = arith.constant dense<0.000000e+00> : vector<16x32xf32>
    %191 = tpu.matmul %188, %190, %cst_85 {dimension_numbers = #tpu.dot_dimension_numbers<[1], [0], [0], [1], [0, 0, 1, 1], [], []>} : vector<16x64xf32>, vector<64x32xf32>, vector<16x32xf32> -> vector<16x32xf32>
    %c0_86 = arith.constant 0 : index
    %c0_87 = arith.constant 0 : index
    %c0_88 = arith.constant 0 : index
    %192 = vector.load %arg18[%c0_86, %c0_87, %c0_88] : memref<2x1x32xf32, #tpu.memory_space<vmem>>, vector<1x1x32xf32>
    %193 = vector.shape_cast %192 : vector<1x1x32xf32> to vector<1x32xf32>
    %194 = vector.broadcast %193 : vector<1x32xf32> to vector<16x32xf32>
    %195 = arith.addf %191, %194 : vector<16x32xf32>
    %196 = arith.addf %195, %144 : vector<16x32xf32>
    %c1_89 = arith.constant 1 : index
    %c0_90 = arith.constant 0 : index
    %c0_91 = arith.constant 0 : index
    %197 = vector.load %arg7[%c1_89, %c0_90, %c0_91] : memref<2x1x32xf32, #tpu.memory_space<vmem>>, vector<1x1x32xf32>
    %198 = vector.shape_cast %197 : vector<1x1x32xf32> to vector<1x32xf32>
    %c1_92 = arith.constant 1 : index
    %c0_93 = arith.constant 0 : index
    %c0_94 = arith.constant 0 : index
    %199 = vector.load %arg8[%c1_92, %c0_93, %c0_94] : memref<2x1x32xf32, #tpu.memory_space<vmem>>, vector<1x1x32xf32>
    %200 = vector.shape_cast %199 : vector<1x1x32xf32> to vector<1x32xf32>
    %cst_95 = arith.constant dense<0.000000e+00> : vector<16xf32>
    %201 = vector.multi_reduction <add>, %196, %cst_95 [1] : vector<16x32xf32> to vector<16xf32>
    %202 = vector.shape_cast %201 : vector<16xf32> to vector<16x1xf32>
    %cst_96 = arith.constant 3.200000e+01 : f32
    %203 = vector.broadcast %cst_96 : f32 to vector<16x1xf32>
    %204 = arith.divf %202, %203 : vector<16x1xf32>
    %205 = vector.broadcast %204 : vector<16x1xf32> to vector<16x32xf32>
    %206 = arith.subf %196, %205 : vector<16x32xf32>
    %207 = arith.mulf %206, %206 : vector<16x32xf32>
    %cst_97 = arith.constant dense<0.000000e+00> : vector<16xf32>
    %208 = vector.multi_reduction <add>, %207, %cst_97 [1] : vector<16x32xf32> to vector<16xf32>
    %209 = vector.shape_cast %208 : vector<16xf32> to vector<16x1xf32>
    %cst_98 = arith.constant 3.200000e+01 : f32
    %210 = vector.broadcast %cst_98 : f32 to vector<16x1xf32>
    %211 = arith.divf %209, %210 : vector<16x1xf32>
    %cst_99 = arith.constant 9.99999974E-6 : f32
    %212 = vector.broadcast %cst_99 : f32 to vector<16x1xf32>
    %213 = arith.addf %211, %212 : vector<16x1xf32>
    %214 = math.rsqrt %213 : vector<16x1xf32>
    %215 = vector.broadcast %214 : vector<16x1xf32> to vector<16x32xf32>
    %216 = arith.mulf %206, %215 : vector<16x32xf32>
    %217 = vector.broadcast %198 : vector<1x32xf32> to vector<16x32xf32>
    %218 = arith.mulf %216, %217 : vector<16x32xf32>
    %219 = vector.broadcast %200 : vector<1x32xf32> to vector<16x32xf32>
    %220 = arith.addf %218, %219 : vector<16x32xf32>
    %c1_100 = arith.constant 1 : index
    %c0_101 = arith.constant 0 : index
    %c0_102 = arith.constant 0 : index
    %221 = vector.load %arg9[%c1_100, %c0_101, %c0_102] : memref<2x32x96xf32, #tpu.memory_space<vmem>>, vector<1x32x96xf32>
    %222 = vector.shape_cast %221 : vector<1x32x96xf32> to vector<32x96xf32>
    %cst_103 = arith.constant dense<0.000000e+00> : vector<16x96xf32>
    %223 = tpu.matmul %220, %222, %cst_103 {dimension_numbers = #tpu.dot_dimension_numbers<[1], [0], [0], [1], [0, 0, 1, 1], [], []>} : vector<16x32xf32>, vector<32x96xf32>, vector<16x96xf32> -> vector<16x96xf32>
    %c1_104 = arith.constant 1 : index
    %c0_105 = arith.constant 0 : index
    %c0_106 = arith.constant 0 : index
    %224 = vector.load %arg10[%c1_104, %c0_105, %c0_106] : memref<2x1x96xf32, #tpu.memory_space<vmem>>, vector<1x1x96xf32>
    %225 = vector.shape_cast %224 : vector<1x1x96xf32> to vector<1x96xf32>
    %226 = vector.broadcast %225 : vector<1x96xf32> to vector<16x96xf32>
    %227 = arith.addf %223, %226 : vector<16x96xf32>
    %228 = vector.extract_strided_slice %227 {offsets = [0, 0], sizes = [16, 32], strides = [1, 1]} : vector<16x96xf32> to vector<16x32xf32>
    %229 = vector.extract_strided_slice %228 {offsets = [0, 0], sizes = [16, 8], strides = [1, 1]} : vector<16x32xf32> to vector<16x8xf32>
    %230 = vector.shape_cast %229 : vector<16x8xf32> to vector<2x8x8xf32>
    %231 = vector.extract_strided_slice %228 {offsets = [0, 8], sizes = [16, 8], strides = [1, 1]} : vector<16x32xf32> to vector<16x8xf32>
    %232 = vector.shape_cast %231 : vector<16x8xf32> to vector<2x8x8xf32>
    %233 = vector.extract_strided_slice %228 {offsets = [0, 16], sizes = [16, 8], strides = [1, 1]} : vector<16x32xf32> to vector<16x8xf32>
    %234 = vector.shape_cast %233 : vector<16x8xf32> to vector<2x8x8xf32>
    %235 = vector.extract_strided_slice %228 {offsets = [0, 24], sizes = [16, 8], strides = [1, 1]} : vector<16x32xf32> to vector<16x8xf32>
    %236 = vector.shape_cast %235 : vector<16x8xf32> to vector<2x8x8xf32>
    %237 = tpu.concatenate %230, %232, %234, %236 in 0 : vector<2x8x8xf32>, vector<2x8x8xf32>, vector<2x8x8xf32>, vector<2x8x8xf32> -> vector<8x8x8xf32>
    %238 = vector.extract_strided_slice %227 {offsets = [0, 32], sizes = [16, 32], strides = [1, 1]} : vector<16x96xf32> to vector<16x32xf32>
    %239 = vector.extract_strided_slice %238 {offsets = [0, 0], sizes = [16, 8], strides = [1, 1]} : vector<16x32xf32> to vector<16x8xf32>
    %240 = vector.shape_cast %239 : vector<16x8xf32> to vector<2x8x8xf32>
    %241 = vector.extract_strided_slice %238 {offsets = [0, 8], sizes = [16, 8], strides = [1, 1]} : vector<16x32xf32> to vector<16x8xf32>
    %242 = vector.shape_cast %241 : vector<16x8xf32> to vector<2x8x8xf32>
    %243 = vector.extract_strided_slice %238 {offsets = [0, 16], sizes = [16, 8], strides = [1, 1]} : vector<16x32xf32> to vector<16x8xf32>
    %244 = vector.shape_cast %243 : vector<16x8xf32> to vector<2x8x8xf32>
    %245 = vector.extract_strided_slice %238 {offsets = [0, 24], sizes = [16, 8], strides = [1, 1]} : vector<16x32xf32> to vector<16x8xf32>
    %246 = vector.shape_cast %245 : vector<16x8xf32> to vector<2x8x8xf32>
    %247 = tpu.concatenate %240, %242, %244, %246 in 0 : vector<2x8x8xf32>, vector<2x8x8xf32>, vector<2x8x8xf32>, vector<2x8x8xf32> -> vector<8x8x8xf32>
    %248 = vector.extract_strided_slice %227 {offsets = [0, 64], sizes = [16, 32], strides = [1, 1]} : vector<16x96xf32> to vector<16x32xf32>
    %249 = vector.extract_strided_slice %248 {offsets = [0, 0], sizes = [16, 8], strides = [1, 1]} : vector<16x32xf32> to vector<16x8xf32>
    %250 = vector.shape_cast %249 : vector<16x8xf32> to vector<2x8x8xf32>
    %251 = vector.extract_strided_slice %248 {offsets = [0, 8], sizes = [16, 8], strides = [1, 1]} : vector<16x32xf32> to vector<16x8xf32>
    %252 = vector.shape_cast %251 : vector<16x8xf32> to vector<2x8x8xf32>
    %253 = vector.extract_strided_slice %248 {offsets = [0, 16], sizes = [16, 8], strides = [1, 1]} : vector<16x32xf32> to vector<16x8xf32>
    %254 = vector.shape_cast %253 : vector<16x8xf32> to vector<2x8x8xf32>
    %255 = vector.extract_strided_slice %248 {offsets = [0, 24], sizes = [16, 8], strides = [1, 1]} : vector<16x32xf32> to vector<16x8xf32>
    %256 = vector.shape_cast %255 : vector<16x8xf32> to vector<2x8x8xf32>
    %257 = tpu.concatenate %250, %252, %254, %256 in 0 : vector<2x8x8xf32>, vector<2x8x8xf32>, vector<2x8x8xf32>, vector<2x8x8xf32> -> vector<8x8x8xf32>
    "tpu.trace_start"() <{level = 10 : i32, message = "bqd,bkd->bqk"}> : () -> ()
    %cst_107 = arith.constant dense<0.000000e+00> : vector<8x8x8xf32>
    %258 = tpu.matmul %237, %247, %cst_107 {dimension_numbers = #tpu.dot_dimension_numbers<[2], [2], [1], [1], [0, 0, 0, 1, 1, 1], [0], [0]>} : vector<8x8x8xf32>, vector<8x8x8xf32>, vector<8x8x8xf32> -> vector<8x8x8xf32>
    "tpu.trace_stop"() : () -> ()
    %cst_108 = arith.constant dense<0xFF800000> : vector<8x8xf32>
    %259 = vector.multi_reduction <maximumf>, %258, %cst_108 [2] : vector<8x8x8xf32> to vector<8x8xf32>
    %260 = vector.shape_cast %259 : vector<8x8xf32> to vector<8x8x1xf32>
    %261 = vector.broadcast %260 : vector<8x8x1xf32> to vector<8x8x8xf32>
    %262 = arith.subf %258, %261 : vector<8x8x8xf32>
    %263 = math.exp %262 : vector<8x8x8xf32>
    %cst_109 = arith.constant dense<0.000000e+00> : vector<8x8xf32>
    %264 = vector.multi_reduction <add>, %263, %cst_109 [2] : vector<8x8x8xf32> to vector<8x8xf32>
    %265 = vector.shape_cast %264 : vector<8x8xf32> to vector<8x8x1xf32>
    %266 = tpu.reciprocal %265 {approx = true} : vector<8x8x1xf32> -> vector<8x8x1xf32>
    %267 = vector.broadcast %266 : vector<8x8x1xf32> to vector<8x8x8xf32>
    %268 = arith.mulf %263, %267 : vector<8x8x8xf32>
    "tpu.trace_start"() <{level = 10 : i32, message = "bqk,bkd->bqd"}> : () -> ()
    %cst_110 = arith.constant dense<0.000000e+00> : vector<8x8x8xf32>
    %269 = tpu.matmul %268, %257, %cst_110 {dimension_numbers = #tpu.dot_dimension_numbers<[2], [1], [1], [2], [0, 0, 0, 1, 1, 2], [0], [0]>} : vector<8x8x8xf32>, vector<8x8x8xf32>, vector<8x8x8xf32> -> vector<8x8x8xf32>
    "tpu.trace_stop"() : () -> ()
    %270 = vector.extract_strided_slice %269 {offsets = [0, 0, 0], sizes = [2, 8, 8], strides = [1, 1, 1]} : vector<8x8x8xf32> to vector<2x8x8xf32>
    %271 = vector.shape_cast %270 : vector<2x8x8xf32> to vector<16x8xf32>
    %272 = vector.extract_strided_slice %269 {offsets = [2, 0, 0], sizes = [2, 8, 8], strides = [1, 1, 1]} : vector<8x8x8xf32> to vector<2x8x8xf32>
    %273 = vector.shape_cast %272 : vector<2x8x8xf32> to vector<16x8xf32>
    %274 = vector.extract_strided_slice %269 {offsets = [4, 0, 0], sizes = [2, 8, 8], strides = [1, 1, 1]} : vector<8x8x8xf32> to vector<2x8x8xf32>
    %275 = vector.shape_cast %274 : vector<2x8x8xf32> to vector<16x8xf32>
    %276 = vector.extract_strided_slice %269 {offsets = [6, 0, 0], sizes = [2, 8, 8], strides = [1, 1, 1]} : vector<8x8x8xf32> to vector<2x8x8xf32>
    %277 = vector.shape_cast %276 : vector<2x8x8xf32> to vector<16x8xf32>
    %278 = tpu.concatenate %271, %273, %275, %277 in 1 : vector<16x8xf32>, vector<16x8xf32>, vector<16x8xf32>, vector<16x8xf32> -> vector<16x32xf32>
    %c1_111 = arith.constant 1 : index
    %c0_112 = arith.constant 0 : index
    %c0_113 = arith.constant 0 : index
    %279 = vector.load %arg11[%c1_111, %c0_112, %c0_113] : memref<2x32x32xf32, #tpu.memory_space<vmem>>, vector<1x32x32xf32>
    %280 = vector.shape_cast %279 : vector<1x32x32xf32> to vector<32x32xf32>
    %cst_114 = arith.constant dense<0.000000e+00> : vector<16x32xf32>
    %281 = tpu.matmul %278, %280, %cst_114 {dimension_numbers = #tpu.dot_dimension_numbers<[1], [0], [0], [1], [0, 0, 1, 1], [], []>} : vector<16x32xf32>, vector<32x32xf32>, vector<16x32xf32> -> vector<16x32xf32>
    %c1_115 = arith.constant 1 : index
    %c0_116 = arith.constant 0 : index
    %c0_117 = arith.constant 0 : index
    %282 = vector.load %arg12[%c1_115, %c0_116, %c0_117] : memref<2x1x32xf32, #tpu.memory_space<vmem>>, vector<1x1x32xf32>
    %283 = vector.shape_cast %282 : vector<1x1x32xf32> to vector<1x32xf32>
    %284 = vector.broadcast %283 : vector<1x32xf32> to vector<16x32xf32>
    %285 = arith.addf %281, %284 : vector<16x32xf32>
    %286 = arith.addf %285, %196 : vector<16x32xf32>
    %c1_118 = arith.constant 1 : index
    %c0_119 = arith.constant 0 : index
    %c0_120 = arith.constant 0 : index
    %287 = vector.load %arg13[%c1_118, %c0_119, %c0_120] : memref<2x1x32xf32, #tpu.memory_space<vmem>>, vector<1x1x32xf32>
    %288 = vector.shape_cast %287 : vector<1x1x32xf32> to vector<1x32xf32>
    %c1_121 = arith.constant 1 : index
    %c0_122 = arith.constant 0 : index
    %c0_123 = arith.constant 0 : index
    %289 = vector.load %arg14[%c1_121, %c0_122, %c0_123] : memref<2x1x32xf32, #tpu.memory_space<vmem>>, vector<1x1x32xf32>
    %290 = vector.shape_cast %289 : vector<1x1x32xf32> to vector<1x32xf32>
    %cst_124 = arith.constant dense<0.000000e+00> : vector<16xf32>
    %291 = vector.multi_reduction <add>, %286, %cst_124 [1] : vector<16x32xf32> to vector<16xf32>
    %292 = vector.shape_cast %291 : vector<16xf32> to vector<16x1xf32>
    %cst_125 = arith.constant 3.200000e+01 : f32
    %293 = vector.broadcast %cst_125 : f32 to vector<16x1xf32>
    %294 = arith.divf %292, %293 : vector<16x1xf32>
    %295 = vector.broadcast %294 : vector<16x1xf32> to vector<16x32xf32>
    %296 = arith.subf %286, %295 : vector<16x32xf32>
    %297 = arith.mulf %296, %296 : vector<16x32xf32>
    %cst_126 = arith.constant dense<0.000000e+00> : vector<16xf32>
    %298 = vector.multi_reduction <add>, %297, %cst_126 [1] : vector<16x32xf32> to vector<16xf32>
    %299 = vector.shape_cast %298 : vector<16xf32> to vector<16x1xf32>
    %cst_127 = arith.constant 3.200000e+01 : f32
    %300 = vector.broadcast %cst_127 : f32 to vector<16x1xf32>
    %301 = arith.divf %299, %300 : vector<16x1xf32>
    %cst_128 = arith.constant 9.99999974E-6 : f32
    %302 = vector.broadcast %cst_128 : f32 to vector<16x1xf32>
    %303 = arith.addf %301, %302 : vector<16x1xf32>
    %304 = math.rsqrt %303 : vector<16x1xf32>
    %305 = vector.broadcast %304 : vector<16x1xf32> to vector<16x32xf32>
    %306 = arith.mulf %296, %305 : vector<16x32xf32>
    %307 = vector.broadcast %288 : vector<1x32xf32> to vector<16x32xf32>
    %308 = arith.mulf %306, %307 : vector<16x32xf32>
    %309 = vector.broadcast %290 : vector<1x32xf32> to vector<16x32xf32>
    %310 = arith.addf %308, %309 : vector<16x32xf32>
    %c1_129 = arith.constant 1 : index
    %c0_130 = arith.constant 0 : index
    %c0_131 = arith.constant 0 : index
    %311 = vector.load %arg15[%c1_129, %c0_130, %c0_131] : memref<2x32x64xf32, #tpu.memory_space<vmem>>, vector<1x32x64xf32>
    %312 = vector.shape_cast %311 : vector<1x32x64xf32> to vector<32x64xf32>
    %cst_132 = arith.constant dense<0.000000e+00> : vector<16x64xf32>
    %313 = tpu.matmul %310, %312, %cst_132 {dimension_numbers = #tpu.dot_dimension_numbers<[1], [0], [0], [1], [0, 0, 1, 1], [], []>} : vector<16x32xf32>, vector<32x64xf32>, vector<16x64xf32> -> vector<16x64xf32>
    %c1_133 = arith.constant 1 : index
    %c0_134 = arith.constant 0 : index
    %c0_135 = arith.constant 0 : index
    %314 = vector.load %arg16[%c1_133, %c0_134, %c0_135] : memref<2x1x64xf32, #tpu.memory_space<vmem>>, vector<1x1x64xf32>
    %315 = vector.shape_cast %314 : vector<1x1x64xf32> to vector<1x64xf32>
    %316 = vector.broadcast %315 : vector<1x64xf32> to vector<16x64xf32>
    %317 = arith.addf %313, %316 : vector<16x64xf32>
    %318 = arith.mulf %317, %317 : vector<16x64xf32>
    %319 = arith.mulf %317, %318 : vector<16x64xf32>
    %cst_136 = arith.constant 4.471500e-02 : f32
    %320 = vector.broadcast %cst_136 : f32 to vector<16x64xf32>
    %321 = arith.mulf %320, %319 : vector<16x64xf32>
    %322 = arith.addf %317, %321 : vector<16x64xf32>
    %cst_137 = arith.constant 0.797884583 : f32
    %323 = vector.broadcast %cst_137 : f32 to vector<16x64xf32>
    %324 = arith.mulf %323, %322 : vector<16x64xf32>
    %325 = math.tanh %324 : vector<16x64xf32>
    %cst_138 = arith.constant 1.000000e+00 : f32
    %326 = vector.broadcast %cst_138 : f32 to vector<16x64xf32>
    %327 = arith.addf %326, %325 : vector<16x64xf32>
    %cst_139 = arith.constant 5.000000e-01 : f32
    %328 = vector.broadcast %cst_139 : f32 to vector<16x64xf32>
    %329 = arith.mulf %328, %327 : vector<16x64xf32>
    %330 = arith.mulf %317, %329 : vector<16x64xf32>
    %c1_140 = arith.constant 1 : index
    %c0_141 = arith.constant 0 : index
    %c0_142 = arith.constant 0 : index
    %331 = vector.load %arg17[%c1_140, %c0_141, %c0_142] : memref<2x64x32xf32, #tpu.memory_space<vmem>>, vector<1x64x32xf32>
    %332 = vector.shape_cast %331 : vector<1x64x32xf32> to vector<64x32xf32>
    %cst_143 = arith.constant dense<0.000000e+00> : vector<16x32xf32>
    %333 = tpu.matmul %330, %332, %cst_143 {dimension_numbers = #tpu.dot_dimension_numbers<[1], [0], [0], [1], [0, 0, 1, 1], [], []>} : vector<16x64xf32>, vector<64x32xf32>, vector<16x32xf32> -> vector<16x32xf32>
    %c1_144 = arith.constant 1 : index
    %c0_145 = arith.constant 0 : index
    %c0_146 = arith.constant 0 : index
    %334 = vector.load %arg18[%c1_144, %c0_145, %c0_146] : memref<2x1x32xf32, #tpu.memory_space<vmem>>, vector<1x1x32xf32>
    %335 = vector.shape_cast %334 : vector<1x1x32xf32> to vector<1x32xf32>
    %336 = vector.broadcast %335 : vector<1x32xf32> to vector<16x32xf32>
    %337 = arith.addf %333, %336 : vector<16x32xf32>
    %338 = arith.addf %337, %286 : vector<16x32xf32>
    %c0_147 = arith.constant 0 : index
    %c0_148 = arith.constant 0 : index
    %339 = vector.load %arg19[%c0_147, %c0_148] : memref<1x32xf32, #tpu.memory_space<vmem>>, vector<1x32xf32>
    %c0_149 = arith.constant 0 : index
    %c0_150 = arith.constant 0 : index
    %340 = vector.load %arg20[%c0_149, %c0_150] : memref<1x32xf32, #tpu.memory_space<vmem>>, vector<1x32xf32>
    %cst_151 = arith.constant dense<0.000000e+00> : vector<16xf32>
    %341 = vector.multi_reduction <add>, %338, %cst_151 [1] : vector<16x32xf32> to vector<16xf32>
    %342 = vector.shape_cast %341 : vector<16xf32> to vector<16x1xf32>
    %cst_152 = arith.constant 3.200000e+01 : f32
    %343 = vector.broadcast %cst_152 : f32 to vector<16x1xf32>
    %344 = arith.divf %342, %343 : vector<16x1xf32>
    %345 = vector.broadcast %344 : vector<16x1xf32> to vector<16x32xf32>
    %346 = arith.subf %338, %345 : vector<16x32xf32>
    %347 = arith.mulf %346, %346 : vector<16x32xf32>
    %cst_153 = arith.constant dense<0.000000e+00> : vector<16xf32>
    %348 = vector.multi_reduction <add>, %347, %cst_153 [1] : vector<16x32xf32> to vector<16xf32>
    %349 = vector.shape_cast %348 : vector<16xf32> to vector<16x1xf32>
    %cst_154 = arith.constant 3.200000e+01 : f32
    %350 = vector.broadcast %cst_154 : f32 to vector<16x1xf32>
    %351 = arith.divf %349, %350 : vector<16x1xf32>
    %cst_155 = arith.constant 9.99999974E-6 : f32
    %352 = vector.broadcast %cst_155 : f32 to vector<16x1xf32>
    %353 = arith.addf %351, %352 : vector<16x1xf32>
    %354 = math.rsqrt %353 : vector<16x1xf32>
    %355 = vector.broadcast %354 : vector<16x1xf32> to vector<16x32xf32>
    %356 = arith.mulf %346, %355 : vector<16x32xf32>
    %357 = vector.broadcast %339 : vector<1x32xf32> to vector<16x32xf32>
    %358 = arith.mulf %356, %357 : vector<16x32xf32>
    %359 = vector.broadcast %340 : vector<1x32xf32> to vector<16x32xf32>
    %360 = arith.addf %358, %359 : vector<16x32xf32>
    %c0_156 = arith.constant 0 : index
    %c0_157 = arith.constant 0 : index
    %361 = vector.load %arg21[%c0_156, %c0_157] : memref<1x32xf32, #tpu.memory_space<vmem>>, vector<1x32xf32>
    %c0_158 = arith.constant 0 : index
    %c0_159 = arith.constant 0 : index
    %362 = vector.load %arg22[%c0_158, %c0_159] : memref<1x32xf32, #tpu.memory_space<vmem>>, vector<1x32xf32>
    %cst_160 = arith.constant dense<0.000000e+00> : vector<16xf32>
    %363 = vector.multi_reduction <add>, %360, %cst_160 [1] : vector<16x32xf32> to vector<16xf32>
    %364 = vector.shape_cast %363 : vector<16xf32> to vector<16x1xf32>
    %cst_161 = arith.constant 3.200000e+01 : f32
    %365 = vector.broadcast %cst_161 : f32 to vector<16x1xf32>
    %366 = arith.divf %364, %365 : vector<16x1xf32>
    %367 = vector.broadcast %366 : vector<16x1xf32> to vector<16x32xf32>
    %368 = arith.subf %360, %367 : vector<16x32xf32>
    %369 = arith.mulf %368, %368 : vector<16x32xf32>
    %cst_162 = arith.constant dense<0.000000e+00> : vector<16xf32>
    %370 = vector.multi_reduction <add>, %369, %cst_162 [1] : vector<16x32xf32> to vector<16xf32>
    %371 = vector.shape_cast %370 : vector<16xf32> to vector<16x1xf32>
    %cst_163 = arith.constant 3.200000e+01 : f32
    %372 = vector.broadcast %cst_163 : f32 to vector<16x1xf32>
    %373 = arith.divf %371, %372 : vector<16x1xf32>
    %cst_164 = arith.constant 9.99999974E-6 : f32
    %374 = vector.broadcast %cst_164 : f32 to vector<16x1xf32>
    %375 = arith.addf %373, %374 : vector<16x1xf32>
    %376 = math.rsqrt %375 : vector<16x1xf32>
    %377 = vector.broadcast %376 : vector<16x1xf32> to vector<16x32xf32>
    %378 = arith.mulf %368, %377 : vector<16x32xf32>
    %379 = vector.broadcast %361 : vector<1x32xf32> to vector<16x32xf32>
    %380 = arith.mulf %378, %379 : vector<16x32xf32>
    %381 = vector.broadcast %362 : vector<1x32xf32> to vector<16x32xf32>
    %382 = arith.addf %380, %381 : vector<16x32xf32>
    %c0_165 = arith.constant 0 : index
    %c0_166 = arith.constant 0 : index
    %383 = vector.load %arg23[%c0_165, %c0_166] : memref<16x32xf32, #tpu.memory_space<vmem>>, vector<16x32xf32>
    tpu.vector_store %arg23[%c0_165, %c0_166], %382 {strides = array<i32>} : memref<16x32xf32, #tpu.memory_space<vmem>>, vector<16x32xf32>,
    return
  }
}

</mosaic_0001>

<bundles_post_ra>
// kernel: hf_speech_backbone_forward.1
= control target key start
LH: loop header
LB: loop body
LE: loop exit
PB: predicated region body
PF: predicated region fallthrough
CT: control target
= control target key end

     0   :  { %s6159_s0 = inlined_call_operand.vmem [shape: f32[32,24], index: 0, kind: input, shape index: {}]   ;;  %s6160_s1 = inlined_call_operand.vmem [shape: f32[24,32], index: 1, kind: input, shape index: {}]   ;;  %s6161_s2 = inlined_call_operand.vmem [shape: f32[1,32], index: 2, kind: input, shape index: {}]   ;;  %s6162_s3 = inlined_call_operand.vmem [shape: f32[3,16,32], index: 3, kind: input, shape index: {}]   ;;  %s6163_s4 = inlined_call_operand.vmem [shape: f32[32,96], index: 4, kind: input, shape index: {}]   ;;  %s6164_s5 = inlined_call_operand.vmem [shape: f32[1,32], index: 5, kind: input, shape index: {}]   ;;  %s6165_s6 = inlined_call_operand.vmem [shape: f32[16,32], index: 6, kind: input, shape index: {}]   ;;  %s6166_s7 = inlined_call_operand.vmem [shape: f32[2,1,32], index: 7, kind: input, shape index: {}]   ;;  %s6167_s8 = inlined_call_operand.vmem [shape: f32[2,1,32], index: 8, kind: input, shape index: {}]   ;;  %s6168_s9 = inlined_call_operand.vmem [shape: f32[2,32,96], index: 9, kind: input, shape index: {}]   ;;  %s6169_s10 = inlined_call_operand.vmem [shape: f32[2,1,96], index: 10, kind: input, shape index: {}]   ;;  %s6170_s11 = inlined_call_operand.vmem [shape: f32[2,32,32], index: 11, kind: input, shape index: {}]   ;;  %s6171_s12 = inlined_call_operand.vmem [shape: f32[2,1,32], index: 12, kind: input, shape index: {}]   ;;  %s6172_s13 = inlined_call_operand.vmem [shape: f32[2,1,32], index: 13, kind: input, shape index: {}]   ;;  %s6173_s14 = inlined_call_operand.vmem [shape: f32[2,1,32], index: 14, kind: input, shape index: {}]   ;;  %s6174_s15 = inlined_call_operand.vmem [shape: f32[2,32,64], index: 15, kind: input, shape index: {}]   ;;  %s6175_s16 = inlined_call_operand.vmem [shape: f32[2,1,64], index: 16, kind: input, shape index: {}]   ;;  %s6176_s17 = inlined_call_operand.vmem [shape: f32[2,64,32], index: 17, kind: input, shape index: {}]   ;;  %s6177_s18 = inlined_call_operand.vmem [shape: f32[2,1,32], index: 18, kind: input, shape index: {}]   ;;  %s6178_s19 = inlined_call_operand.vmem [shape: f32[1,32], index: 19, kind: input, shape index: {}]   ;;  %s6179_s20 = inlined_call_operand.vmem [shape: f32[1,32], index: 20, kind: input, shape index: {}]   ;;  %s6180_s21 = inlined_call_operand.vmem [shape: f32[1,32], index: 21, kind: input, shape index: {}]   ;;  %s6181_s22 = inlined_call_operand.vmem [shape: f32[1,32], index: 22, kind: input, shape index: {}]   ;;  %s6182_s23 = inlined_call_operand.hbm [shape: f32[16,32], index: 23, kind: output, shape index: {}]  }
   0x1   :  { %6193 = sst [smem:[#allocation5_spill]] %s6159_s0 }
   0x2   :  { %6194 = sst [smem:[#allocation6_spill]] %s6160_s1 }
   0x3   :  { %6195 = sst [smem:[#allocation7_spill]] %s6161_s2 }
   0x4   :  { %6196 = sst [smem:[#allocation8_spill]] %s6162_s3 }
   0x5   :  { %6197 = sst [smem:[#allocation9_spill]] %s6163_s4 }
   0x6   :  { %6198 = sst [smem:[#allocation10_spill]] %s6164_s5 }
   0x7   :  { %6199 = sst [smem:[#allocation11_spill]] %s6165_s6 }
   0x8   :  { %6200 = sst [smem:[#allocation12_spill]] %s6166_s7 }
   0x9   :  { %s6201_s24 = sld [smem:[#allocation6_spill]]  ;;  %vm89_vm0 = vcmask 195584   ;;  %s6202_s2 = sld [smem:[#allocation5_spill]] }
   0xf   :  { %v79_v0 = vld [vmem:[%s6201_s24] sm:$0xff]  ;;  %v80_v1 = vld [vmem:[%s6201_s24 + $0x8] sm:$0xff]  ;;  %v81_v4 = vld [vmem:[%s6201_s24 + $0x10] sm:$0xff] }
  0x10   :  { %v5027_v2 = vpack.c.bf16 %v80_v1, %v79_v0  ;;  %v75_v3 = vld [vmem:[%s6202_s2] sm:$0xff] }
  0x11   :  { %4710 = vmatprep.mubr.msk.f32.mxu1 %vm89_vm0, %v75_v3 }
  0x12   :  { %28 = vsyncpa [#allocation3], 0  ;;  %5028 = vmatprep.subr.bf16.mxu1 %v5027_v2  ;;  %v76_v5 = vld [vmem:[%s6202_s2 + $0x8] sm:$0xff]  ;;  %v77_v6 = vld [vmem:[%s6202_s2 + $0x10] sm:$0xff]  ;;  %s6203_s25 = sld [smem:[#allocation9_spill]]  ;;  %s6204_s29 = sld [smem:[#allocation7_spill]] }
  0x13   :  { %5030 = vmatpush3.bf16.msra.mxu1 %v5027_v2  ;;  %v78_v7 = vld [vmem:[%s6202_s2 + $0x18] sm:$0xff]  ;;  %vm227_vm1 = vcmask 261120   ;;  %s6205_s4 = sld [smem:[#allocation8_spill]]  ;;  %s5311_s30 = smov 64   ;;  %vm5314_vm2 = vmmov 0   ;;  %vm790_vm3 = vcmask 64512  }
  0x14   :  { %4708 = vmatprep.subr.mxu1 %v81_v4  ;;  %s5312_s24 = smov 96   ;;  %s6207_s1 = sld [smem:[#allocation11_spill]]  ;;  %vm2119_vm4 = vcmask 130048   ;;  %vm2387_vm5 = vcmask 523264  }
  0x15   :  { %s5315_s2 = smov 120   ;;  %s5316_s28 = smov 104  }
  0x16   :  { %s5318_s7 = smov 8   ;;  %s6191_s3 = smov 16  }
  0x17   :  { %4709 = vmatpush3.msra.mxu1 %v81_v4  ;;  %s6189_s0 = smov 24   ;;  %s6209_s27 = smov 16  }
  0x18   :  { %4711 = vmatmul.mubr.msk.f32.vlgmr.msra.gmra.mrb[0].mxu1 %vm89_vm0, %v76_v5  ;;  %v223_v8 = vld [vmem:[%s6203_s25] sm:$0xff]  ;;  %v224_v9 = vld [vmem:[%s6203_s25 + $0x8] sm:$0xff]  ;;  %v225_v11 = vld [vmem:[%s6203_s25 + $0x10] sm:$0xff] }
  0x19   :  { %4713 = vmatprep.mubr.msk.f32.mxu1 %vm89_vm0, %v77_v6  ;;  %v5031_v10 = vpack.c.bf16 %v224_v9, %v223_v8  ;;  %v226_v12 = vld [vmem:[%s6203_s25 + $0x18] sm:$0xff]  ;;  %v4419_v14 = vld [vmem:[%s6204_s29] ss:$0 sm:$0xff]  ;;  %v4428_v61 = vld [vmem:[%s6205_s4 + $0x10] sm:$0xff]  ;;  %s6206_s25 = sld [smem:[#allocation10_spill]]  ;;  %s5317_s29 = smov 112  }
  0x1a   :  { %v5035_v13 = vpack.c.bf16 %v226_v12, %v225_v11  ;;  %4738 = vmatprep.mubr.msk.f32.mxu0 %vm227_vm1, %v4428_v61 }
  0x1b   :  { %5032 = vmatprep.subr.bf16.mxu1 %v5031_v10 }
  0x1c   :  { %4714 = vmatmul.mubr.msk.f32.gmra.mrb[2].mxu1 %vm89_vm0, %v78_v7 }
  0x1d   :  { %5034 = vmatpush3.bf16.msra.mxu1 %v5031_v10 }
  0x1e   :  { %5036 = vmatprep.subr.bf16.mxu1 %v5035_v13 }
  0x21   :  { %5038 = vmatpush3.bf16.msra.mxu1 %v5035_v13  ;;  %v4429_v13 = vld [vmem:[%s6205_s4 + $0x18] sm:$0xff] }
  0xeb   :  { %v4712_v15 = vpop.f32.mrb[0].mxu1 }
  0xec   :  { %v174_v16 = vadd.f32 %v4712_v15, %v4419_v14  ;;  %v168_v17 = vpop.f32.mrb[1].mxu1 }
  0xed   :  { %v169_v18 = vadd.f32 %v4419_v14, %v168_v17 }
  0xee   :  { %v188_v19 = vmul.f32 %v174_v16, %v174_v16 }
  0xef   :  { %v187_v20 = vmul.f32 %v169_v18, %v169_v18  ;;  %v4715_v21 = vpop.f32.mrb[2].mxu1 }
  0xf0   :  { %v192_v22 = vmul.f32 %v188_v19, %v174_v16  ;;  %v184_v23 = vadd.f32 %v4715_v21, %v4419_v14  ;;  %v178_v24 = vpop.f32.mrb[3].mxu1  ;;  %v326_v21 = vld [vmem:[%s6205_s4 + $0x8] sm:$0xff] }
  0xf1   :  { %v191_v25 = vmul.f32 %v187_v20, %v169_v18  ;;  %v179_v26 = vadd.f32 %v4419_v14, %v178_v24  ;;  %v325_v14 = vld [vmem:[%s6205_s4] sm:$0xff]  ;;  %v4435_v24 = vld [vmem:[%s6205_s4 + $0x28] sm:$0xff] }
  0xf2   :  { %v196_v27 = vmul.f32 0.044715, %v192_v22  ;;  %v190_v28 = vmul.f32 %v184_v23, %v184_v23  ;;  %v4434_v22 = vld [vmem:[%s6205_s4 + $0x20] sm:$0xff] }
  0xf3   :  { %v195_v29 = vmul.f32 0.044715, %v191_v25  ;;  %v189_v30 = vmul.f32 %v179_v26, %v179_v26  ;;  %v4438_v25 = vld [vmem:[%s6206_s25] ss:$0 sm:$0xff] }
  0xf4   :  { %v200_v31 = vadd.f32 %v196_v27, %v174_v16  ;;  %v194_v32 = vmul.f32 %v190_v28, %v184_v23 }
  0xf5   :  { %v199_v33 = vadd.f32 %v195_v29, %v169_v18  ;;  %v193_v34 = vmul.f32 %v189_v30, %v179_v26 }
  0xf6   :  { %v204_v35 = vmul.f32 0.7978846, %v200_v31  ;;  %v198_v36 = vmul.f32 0.044715, %v194_v32 }
  0xf7   :  { %v203_v37 = vmul.f32 0.7978846, %v199_v33  ;;  %v197_v38 = vmul.f32 0.044715, %v193_v34 }
  0xf8   :  { %5179 = vtanh.f32 %v204_v35  ;;  %v202_v39 = vadd.f32 %v198_v36, %v184_v23 }
  0xf9   :  { %5181 = vtanh.f32 %v203_v37  ;;  %v201_v40 = vadd.f32 %v197_v38, %v179_v26 }
  0xfa   :  { %v206_v41 = vmul.f32 0.7978846, %v202_v39 }
  0xfb   :  { %v205_v42 = vmul.f32 0.7978846, %v201_v40 }
  0xfc   :  { %5183 = vtanh.f32 %v206_v41 }
  0xfd   :  { %5185 = vtanh.f32 %v205_v42 }
 0x102   :  { %v5180_v43 = vpop.eup %5179 }
 0x103   :  { %v5182_v44 = vpop.eup %5181  ;;  %v212_v45 = vadd.f32 1.0, %v5180_v43 }
 0x104   :  { %v211_v46 = vadd.f32 1.0, %v5182_v44 }
 0x105   :  { %v216_v47 = vmul.f32 0.5, %v212_v45  ;;  %v634_v45 = vld [vmem:[%s6207_s1 + $0x8] sm:$0xff] }
 0x106   :  { %v5184_v48 = vpop.eup %5183  ;;  %v215_v49 = vmul.f32 0.5, %v211_v46 }
 0x107   :  { %v5186_v50 = vpop.eup %5185  ;;  %v214_v51 = vadd.f32 1.0, %v5184_v48  ;;  %v220_v54 = vmul.f32 %v216_v47, %v174_v16  ;;  %v633_v48 = vld [vmem:[%s6207_s1] sm:$0xff]  ;;  %s6208_s1 = sld [smem:[#allocation12_spill]] }
 0x108   :  { %v219_v52 = vmul.f32 %v215_v49, %v169_v18  ;;  %v213_v53 = vadd.f32 1.0, %v5186_v50 }
 0x109   :  { %v218_v55 = vmul.f32 0.5, %v214_v51 }
 0x10a   :  { %4724 = vmatprep.mubr.msk.f32.mxu1 %vm227_vm1, %v219_v52  ;;  %v217_v56 = vmul.f32 0.5, %v213_v53 }
 0x10b   :  { %4725 = vmatmul.mubr.msk.f32.vlgmr.msra.gmra.mrb[4].mxu1 %vm227_vm1, %v220_v54  ;;  %v222_v58 = vmul.f32 %v218_v55, %v184_v23 }
 0x10c   :  { %v221_v57 = vmul.f32 %v217_v56, %v179_v26 }
 0x10e   :  { %4727 = vmatprep.mubr.msk.f32.mxu1 %vm227_vm1, %v221_v57 }
 0x10f   :  { %4728 = vmatmul.mubr.msk.f32.gmra.mrb[6].mxu1 %vm227_vm1, %v222_v58 }
 0x1de   :  { %v4726_v59 = vpop.f32.mrb[4].mxu1 }
 0x1df   :  { %v306_v60 = vpop.f32.mrb[5].mxu1 }
 0x1e0   :  { %v5047_v62 = vpack.c.bf16 %v4726_v59, %v306_v60  ;;  %v5169_v63 = vpack.i.bf16 %v4726_v59, %v306_v60 }
 0x1e2   :  { %5170 = vrot.lane.b32.xlu1 %v5169_v63, %s5311_s30  ;;  %5160 = vrot.lane.b32.xlu0 %v5169_v63, %s5312_s24  ;;  %v4729_v0 = vpop.f32.mrb[6].mxu1 }
 0x1e3   :  { %v316_v1 = vpop.f32.mrb[7].mxu1 }
 0x1e4   :  { %v5174_v2 = vpack.i.bf16 %v4729_v0, %v316_v1  ;;  %v5051_v3 = vpack.c.bf16 %v4729_v0, %v316_v1  ;;  %v682_v0 = vld [vmem:[%s6168_s9] sm:$0xff]  ;;  %v683_v1 = vld [vmem:[%s6168_s9 + $0x8] sm:$0xff] }
 0x1e6   :  { %5175 = vrot.lane.b32.xlu1 %v5174_v2, %s5311_s30  ;;  %5165 = vrot.lane.b32.xlu0 %v5174_v2, %s5312_s24  ;;  %v684_v2 = vld [vmem:[%s6168_s9 + $0x10] sm:$0xff] }
 0x254   :  { %v5161_v4 = vpop.permute.xlu0 %5160  ;;  %v5171_v12 = vpop.permute.xlu1 %5170 }
 0x255   :  { %v5163_v5 = vunpack.i.h.bf16 %v5161_v4  ;;  %v5162_v6 = vunpack.i.l.bf16 %v5161_v4  ;;  %v5173_v15 = vunpack.i.h.bf16 %v5171_v12  ;;  %v5172_v16 = vunpack.i.l.bf16 %v5171_v12  ;;  %v685_v4 = vld [vmem:[%s6168_s9 + $0x18] sm:$0xff] }
 0x257   :  { %v5039_v7 = vpack.c.bf16 %v5163_v5, %v5162_v6  ;;  %v5055_v20 = vpack.c.bf16 %v5173_v15, %v5172_v16  ;;  %v5067_v5 = vpack.c.bf16 %v685_v4, %v684_v2  ;;  %v4440_v15 = vld [vmem:[%s6167_s8] ss:$0 sm:$0xff] }
 0x258   :  { %v5166_v8 = vpop.permute.xlu0 %5165  ;;  %v5176_v17 = vpop.permute.xlu1 %5175 }
 0x259   :  { %v5168_v9 = vunpack.i.h.bf16 %v5166_v8  ;;  %v5167_v10 = vunpack.i.l.bf16 %v5166_v8  ;;  %5040 = vmatprep.subr.bf16.mxu0 %v5039_v7  ;;  %v5178_v18 = vunpack.i.h.bf16 %v5176_v17  ;;  %v5177_v19 = vunpack.i.l.bf16 %v5176_v17 }
 0x25a   :  { %5042 = vmatpush3.bf16.msra.mxu0 %v5039_v7 }
 0x25b   :  { %v5043_v11 = vpack.c.bf16 %v5168_v9, %v5167_v10  ;;  %v5059_v23 = vpack.c.bf16 %v5178_v18, %v5177_v19 }
 0x25d   :  { %5044 = vmatprep.subr.bf16.mxu0 %v5043_v11 }
 0x25e   :  { %5046 = vmatpush3.bf16.msra.mxu0 %v5043_v11 }
 0x25f   :  { %5048 = vmatprep.subr.bf16.mxu0 %v5047_v62 }
 0x261   :  { %4739 = vmatmul.mubr.msk.f32.vlgmr.msra.gmra.mrb[0].mxu0 %vm227_vm1, %v4429_v13  ;;  %v4439_v13 = vld [vmem:[%s6208_s1] ss:$0 sm:$0xff] }
 0x262   :  { %5050 = vmatpush3.bf16.msra.mxu0 %v5047_v62  ;;  %4749 = vmatprep.mubr.msk.f32.mxu0 %vm227_vm1, %v325_v14 }
 0x263   :  { %5052 = vmatprep.subr.bf16.mxu0 %v5051_v3 }
 0x266   :  { %5054 = vmatpush3.bf16.msra.mxu0 %v5051_v3  ;;  %v5063_v3 = vpack.c.bf16 %v683_v1, %v682_v0 }
 0x267   :  { %5056 = vmatprep.subr.bf16.mxu0 %v5055_v20 }
 0x268   :  { %5064 = vmatprep.subr.bf16.mxu1 %v5063_v3 }
 0x269   :  { %4750 = vmatmul.mubr.msk.f32.vlgmr.msra.gmra.mrb[0].mxu0 %vm227_vm1, %v326_v21  ;;  %5066 = vmatpush3.bf16.msra.mxu1 %v5063_v3 }
 0x26a   :  { %5058 = vmatpush3.bf16.msra.mxu0 %v5055_v20  ;;  %4760 = vmatprep.mubr.msk.f32.mxu0 %vm227_vm1, %v4434_v22  ;;  %v5313_v22 = vmov 0.0  }
 0x26b   :  { %5060 = vmatprep.subr.bf16.mxu0 %v5059_v23  ;;  %5068 = vmatprep.subr.bf16.mxu1 %v5067_v5 }
 0x26d   :  { %5070 = vmatpush3.bf16.msra.mxu1 %v5067_v5 }
 0x26e   :  { %5062 = vmatpush3.bf16.msra.mxu0 %v5059_v23  ;;  %4774 = vmatprep.subr.mxu1 %v5313_v22  ;;  %v4441_v23 = vld [vmem:[%s6169_s10] ss:$0 sm:$0xff] }
 0x26f   :  { %4794 = vmatprep.subr.mxu0 %v5313_v22 }
 0x271   :  { %4761 = vmatmul.mubr.msk.f32.vlgmr.msra.gmra.mrb[0].mxu0 %vm227_vm1, %v4435_v24 }
 0x272   :  { %4796 = vmatprep.mubr.msk.f32.mxu0 %vm5314_vm2, %v5313_v22 }
 0x344   :  { %v4762_v26 = vpop.f32.mrb[0].mxu0 }
 0x345   :  { %v614_v27 = vadd.f32 %v4762_v26, %v4438_v25  ;;  %v595_v28 = vpop.f32.mrb[1].mxu0 }
 0x346   :  { %v613_v29 = vadd.f32 %v4438_v25, %v595_v28 }
 0x347   :  { %v616_v30 = vmul.f32 %v614_v27, %v614_v27 }
 0x348   :  { %v615_v31 = vmul.f32 %v613_v29, %v613_v29 }
 0x349   :  { %v618_v32 = vmul.f32 %v616_v30, %v614_v27 }
 0x34a   :  { %v617_v33 = vmul.f32 %v615_v31, %v613_v29 }
 0x34b   :  { %v620_v34 = vmul.f32 0.044715, %v618_v32 }
 0x34c   :  { %v619_v35 = vmul.f32 0.044715, %v617_v33 }
 0x34d   :  { %v622_v36 = vadd.f32 %v620_v34, %v614_v27 }
 0x34e   :  { %v621_v37 = vadd.f32 %v619_v35, %v613_v29 }
 0x34f   :  { %v624_v38 = vmul.f32 0.7978846, %v622_v36 }
 0x350   :  { %v623_v39 = vmul.f32 0.7978846, %v621_v37 }
 0x351   :  { %5187 = vtanh.f32 %v624_v38 }
 0x352   :  { %5189 = vtanh.f32 %v623_v39 }
 0x35b   :  { %v5188_v40 = vpop.eup %5187 }
 0x35c   :  { %v5190_v41 = vpop.eup %5189  ;;  %v628_v42 = vadd.f32 1.0, %v5188_v40 }
 0x35d   :  { %v627_v43 = vadd.f32 1.0, %v5190_v41 }
 0x35e   :  { %v630_v44 = vmul.f32 0.5, %v628_v42 }
 0x35f   :  { %v629_v46 = vmul.f32 0.5, %v627_v43 }
 0x360   :  { %v632_v47 = vmul.f32 %v630_v44, %v614_v27 }
 0x361   :  { %v631_v49 = vmul.f32 %v629_v46, %v613_v29 }
 0x362   :  { %v5524_v50 = vadd.f32 %v634_v45, %v632_v47 }
 0x363   :  { %v5526_v51 = vadd.f32 %v633_v48, %v631_v49 }
 0x364   :  { %v642_v52 = vsel %vm227_vm1, %v5524_v50, 0.0 }
 0x365   :  { %643 = vadd.xlane.f32.xlu1 %v642_v52  ;;  %v639_v53 = vsel %vm227_vm1, %v5526_v51, 0.0 }
 0x366   :  { %640 = vadd.xlane.f32.xlu0 %v639_v53 }
 0x3f2   :  { %v644_v54 = vpop.xlane.xlu1 %643 }
 0x3f3   :  { %v647_v55 = vmul.f32 0.03125, %v644_v54  ;;  %v641_v56 = vpop.xlane.xlu0 %640 }
 0x3f4   :  { %v646_v57 = vmul.f32 0.03125, %v641_v56 }
 0x3f5   :  { %v649_v58 = vsub.f32 %v5524_v50, %v647_v55 }
 0x3f6   :  { %v648_v59 = vsub.f32 %v5526_v51, %v646_v57 }
 0x3f7   :  { %v651_v62 = vmul.f32 %v649_v58, %v649_v58 }
 0x3f8   :  { %v650_v60 = vmul.f32 %v648_v59, %v648_v59 }
 0x3f9   :  { %v655_v63 = vsel %vm227_vm1, %v651_v62, 0.0 }
 0x3fa   :  { %v652_v61 = vsel %vm227_vm1, %v650_v60, 0.0 }
 0x3fb   :  { %653 = vadd.xlane.f32.xlu0 %v652_v61 }
 0x3ff   :  { %656 = vadd.xlane.f32.xlu0 %v655_v63 }
 0x488   :  { %v654_v6 = vpop.xlane.xlu0 %653 }
 0x489   :  { %v658_v7 = vmul.f32 0.03125, %v654_v6 }
 0x48b   :  { %v660_v8 = vadd.f32 1e-05, %v658_v7 }
 0x48c   :  { %v657_v9 = vpop.xlane.xlu0 %656 }
 0x48d   :  { %5191 = vrsqrt.f32 %v660_v8  ;;  %v659_v10 = vmul.f32 0.03125, %v657_v9 }
 0x48f   :  { %v661_v11 = vadd.f32 1e-05, %v659_v10 }
 0x491   :  { %5193 = vrsqrt.f32 %v661_v11 }
 0x497   :  { %v5192_v12 = vpop.eup %5191 }
 0x498   :  { %v664_v14 = vmul.f32 %v5192_v12, %v648_v59 }
 0x49a   :  { %v672_v16 = vmul.f32 %v4439_v13, %v664_v14 }
 0x49b   :  { %v5194_v17 = vpop.eup %5193 }
 0x49c   :  { %v665_v18 = vmul.f32 %v5194_v17, %v649_v58  ;;  %v680_v19 = vadd.f32 %v4440_v15, %v672_v16 }
 0x49e   :  { %v673_v20 = vmul.f32 %v4439_v13, %v665_v18  ;;  %4771 = vmatprep.mubr.msk.f32.mxu1 %vm227_vm1, %v680_v19 }
 0x4a0   :  { %v681_v21 = vadd.f32 %v4440_v15, %v673_v20 }
 0x4a2   :  { %4772 = vmatmul.mubr.msk.f32.vlgmr.msra.gmra.mrb[8].mxu1 %vm227_vm1, %v681_v21 }
 0x4a3   :  { %4776 = vmatprep.mubr.msk.f32.mxu1 %vm5314_vm2, %v5313_v22 }
 0x575   :  { %v4773_v24 = vpop.f32.mrb[8].mxu1 }
 0x576   :  { %v5565_v25 = vadd.f32 %v4773_v24, %v4441_v23  ;;  %v765_v26 = vpop.f32.mrb[9].mxu1 }
 0x577   :  { %v5567_v27 = vadd.f32 %v4441_v23, %v765_v26 }
 0x578   :  { %778 = vrot.lane.b32.xlu0 %v5565_v25, %s5315_s2 }
 0x579   :  { %776 = vrot.lane.b32.xlu1 %v5567_v27, %s5315_s2 }
 0x57c   :  { %784 = vrot.lane.b32.xlu0 %v5567_v27, %s5316_s28 }
 0x57d   :  { %780 = vrot.lane.b32.xlu1 %v5567_v27, %s5317_s29 }
 0x580   :  { %788 = vrot.lane.b32.xlu0 %v5567_v27, %s5312_s24 }
 0x581   :  { %782 = vrot.lane.b32.xlu1 %v5565_v25, %s5317_s29 }
 0x585   :  { %786 = vrot.lane.b32.xlu1 %v5565_v25, %s5316_s28 }
 0x589   :  { %865 = vrot.lane.b32.xlu1 %v5565_v25, %s5312_s24 }
 0x5ea   :  { %v5585_v28 = vpop.permute.xlu0 %778 }
 0x5eb   :  { %1017 = vrot.lane.b32.xlu1 %v5585_v28, %s5312_s24  ;;  %v5589_v29 = vpop.permute.xlu1 %776 }
 0x5ec   :  { %941 = vrot.lane.b32.xlu0 %v5589_v29, %s5312_s24 }
 0x5ee   :  { %v5593_v30 = vpop.permute.xlu0 %784 }
 0x5ef   :  { %v5595_v31 = vpop.permute.xlu1 %780 }
 0x5f0   :  { %1093 = vrot.lane.b32.xlu0 %v5595_v31, %s5312_s24 }
 0x5f2   :  { %v789_v32 = vpop.permute.xlu0 %788 }
 0x5f3   :  { %4775 = vmatpush3.xpose.msk.msra.mxu1 %vm790_vm3, %v789_v32  ;;  %v5600_v33 = vpop.permute.xlu1 %782 }
 0x5f4   :  { %1245 = vrot.lane.b32.xlu0 %v5593_v30, %s5312_s24  ;;  %1169 = vrot.lane.b32.xlu1 %v5600_v33, %s5312_s24 }
 0x5f5   :  { %4779 = vmatprep.subr.mxu1 %v5313_v22 }
 0x5f6   :  { %4777 = vmatmul.mubr.msk.f32.vlgmr.msra.gmra.mrb[10].mxu1 %vm790_vm3, %v5567_v27 }
 0x5f7   :  { %v5609_v34 = vpop.permute.xlu1 %786  ;;  %4781 = vmatprep.mubr.msk.f32.mxu1 %vm5314_vm2, %v5313_v22 }
 0x5f8   :  { %1321 = vrot.lane.b32.xlu1 %v5609_v34, %s5312_s24 }
 0x5fb   :  { %v866_v35 = vpop.permute.xlu1 %865 }
 0x5fc   :  { %4780 = vmatpush3.xpose.msk.msra.mxu1 %vm790_vm3, %v866_v35 }
 0x5fd   :  { %4784 = vmatprep.subr.mxu1 %v5313_v22 }
 0x5ff   :  { %4782 = vmatmul.mubr.msk.f32.vlgmr.msra.gmra.mrb[12].mxu1 %vm790_vm3, %v5565_v25 }
 0x600   :  { %4786 = vmatprep.mubr.msk.f32.mxu1 %vm5314_vm2, %v5313_v22 }
 0x65d   :  { %v1018_v37 = vpop.permute.xlu1 %1017 }
 0x65e   :  { %v942_v36 = vpop.permute.xlu0 %941 }
 0x65f   :  { %4785 = vmatpush3.xpose.msk.msra.mxu1 %vm790_vm3, %v942_v36 }
 0x660   :  { %4789 = vmatprep.subr.mxu1 %v5313_v22 }
 0x662   :  { %v1094_v38 = vpop.permute.xlu0 %1093  ;;  %4787 = vmatmul.mubr.msk.f32.vlgmr.msra.gmra.mrb[14].mxu1 %vm790_vm3, %v5589_v29 }
 0x663   :  { %4790 = vmatpush3.xpose.msk.msra.mxu1 %vm790_vm3, %v1018_v37  ;;  %4795 = vmatpush3.xpose.msk.msra.mxu0 %vm790_vm3, %v1094_v38 }
 0x664   :  { %4791 = vmatprep.mubr.msk.f32.mxu1 %vm5314_vm2, %v5313_v22  ;;  %4804 = vmatprep.subr.mxu0 %v5313_v22 }
 0x665   :  { %4799 = vmatprep.subr.mxu1 %v5313_v22 }
 0x666   :  { %4797 = vmatmul.mubr.msk.f32.vlgmr.msra.gmra.mrb[2].mxu0 %vm790_vm3, %v5595_v31  ;;  %v1246_v39 = vpop.permute.xlu0 %1245  ;;  %4792 = vmatmul.mubr.msk.f32.vlgmr.msra.gmra.mrb[16].mxu1 %vm790_vm3, %v5585_v28  ;;  %v1170_v40 = vpop.permute.xlu1 %1169 }
 0x667   :  { %4800 = vmatpush3.xpose.msk.msra.mxu1 %vm790_vm3, %v1170_v40  ;;  %4805 = vmatpush3.xpose.msk.msra.mxu0 %vm790_vm3, %v1246_v39 }
 0x668   :  { %4801 = vmatprep.mubr.msk.f32.mxu1 %vm5314_vm2, %v5313_v22  ;;  %4806 = vmatprep.mubr.msk.f32.mxu0 %vm5314_vm2, %v5313_v22 }
 0x669   :  { %4809 = vmatprep.subr.mxu1 %v5313_v22  ;;  %4814 = vmatprep.subr.mxu0 %v5313_v22 }
 0x66a   :  { %4802 = vmatmul.mubr.msk.f32.vlgmr.msra.gmra.mrb[18].mxu1 %vm790_vm3, %v5600_v33  ;;  %4807 = vmatmul.mubr.msk.f32.vlgmr.msra.gmra.mrb[4].mxu0 %vm790_vm3, %v5593_v30  ;;  %v1322_v41 = vpop.permute.xlu1 %1321 }
 0x66b   :  { %4810 = vmatpush3.xpose.msk.msra.mxu1 %vm790_vm3, %v1322_v41  ;;  %4811 = vmatprep.mubr.msk.f32.mxu1 %vm5314_vm2, %v5313_v22 }
 0x66c   :  { %4819 = vmatprep.subr.mxu1 %v5313_v22  ;;  %4816 = vmatprep.mubr.msk.f32.mxu0 %vm5314_vm2, %v5313_v22 }
 0x66e   :  { %4812 = vmatmul.mubr.msk.f32.vlgmr.msra.gmra.mrb[20].mxu1 %vm790_vm3, %v5609_v34 }
 0x66f   :  { %4821 = vmatprep.mubr.msk.f32.mxu1 %vm5314_vm2, %v5313_v22 }
 0x6c9   :  { %v861_v42 = vpop.f32.mrb[10].mxu1 }
 0x6ca   :  { %v4778_v43 = vpop.f32.mrb[11].mxu1  ;;  %v1397_v44 = vsel %vm790_vm3, %v861_v42, -inf }
 0x6cb   :  { %1398 = vmax.xlane.f32.xlu0 %v1397_v44 }
 0x6d2   :  { %v937_v45 = vpop.f32.mrb[12].mxu1 }
 0x6d3   :  { %v4783_v46 = vpop.f32.mrb[13].mxu1  ;;  %v1400_v47 = vsel %vm790_vm3, %v937_v45, -inf }
 0x6d4   :  { %1401 = vmax.xlane.f32.xlu1 %v1400_v47 }
 0x735   :  { %v1013_v48 = vpop.f32.mrb[14].mxu1 }
 0x736   :  { %v4788_v49 = vpop.f32.mrb[15].mxu1  ;;  %v1403_v52 = vsel %vm790_vm3, %v1013_v48, -inf }
 0x737   :  { %1404 = vmax.xlane.f32.xlu0 %v1403_v52 }
 0x739   :  { %v1089_v53 = vpop.f32.mrb[16].mxu1  ;;  %v1165_v54 = vpop.f32.mrb[2].mxu0 }
 0x73a   :  { %v4793_v55 = vpop.f32.mrb[17].mxu1  ;;  %v4798_v56 = vpop.f32.mrb[3].mxu0  ;;  %v1409_v57 = vsel %vm790_vm3, %v1165_v54, -inf  ;;  %v1406_v58 = vsel %vm790_vm3, %v1089_v53, -inf }
 0x73b   :  { %1410 = vmax.xlane.f32.xlu1 %v1409_v57  ;;  %1407 = vmax.xlane.f32.xlu0 %v1406_v58 }
 0x73d   :  { %v1241_v59 = vpop.f32.mrb[18].mxu1  ;;  %v1317_v60 = vpop.f32.mrb[4].mxu0 }
 0x73e   :  { %v4803_v61 = vpop.f32.mrb[19].mxu1  ;;  %v4808_v62 = vpop.f32.mrb[5].mxu0  ;;  %v1415_v63 = vsel %vm790_vm3, %v1317_v60, -inf  ;;  %v1412_v0 = vsel %vm790_vm3, %v1241_v59, -inf }
 0x73f   :  { %1416 = vmax.xlane.f32.xlu1 %v1415_v63  ;;  %1413 = vmax.xlane.f32.xlu0 %v1412_v0 }
 0x741   :  { %v1393_v1 = vpop.f32.mrb[20].mxu1 }
 0x742   :  { %v4813_v2 = vpop.f32.mrb[21].mxu1  ;;  %v1418_v3 = vsel %vm790_vm3, %v1393_v1, -inf }
 0x743   :  { %1419 = vmax.xlane.f32.xlu0 %v1418_v3 }
 0x750   :  { %1485 = vrot.lane.b32.xlu1 %v5567_v27, %s5311_s30 }
 0x754   :  { %1637 = vrot.lane.b32.xlu1 %v5589_v29, %s5311_s30 }
 0x758   :  { %1713 = vrot.lane.b32.xlu1 %v5585_v28, %s5311_s30  ;;  %v1399_v6 = vpop.xlane.xlu0 %1398 }
 0x759   :  { %1561 = vrot.lane.b32.xlu0 %v5565_v25, %s5311_s30  ;;  %v1421_v7 = vsub.f32 %v861_v42, %v1399_v6 }
 0x75b   :  { %v1429_v9 = vmul.f32 1.442695, %v1421_v7 }
 0x75c   :  { %1865 = vrot.lane.b32.xlu1 %v5600_v33, %s5311_s30 }
 0x75d   :  { %1789 = vrot.lane.b32.xlu0 %v5595_v31, %s5311_s30 }
 0x761   :  { %v1402_v4 = vpop.xlane.xlu1 %1401 }
 0x762   :  { %v1422_v5 = vsub.f32 %v937_v45, %v1402_v4 }
 0x764   :  { %v1431_v8 = vmul.f32 1.442695, %v1422_v5 }
 0x766   :  { %5195 = vpow2.f32 %v1431_v8 }
 0x767   :  { %5197 = vpow2.f32 %v1429_v9 }
 0x770   :  { %v5677_v10 = vpop.eup %5195 }
 0x771   :  { %v1448_v11 = vsel %vm790_vm3, %v5677_v10, 0.0  ;;  %v5681_v12 = vpop.eup %5197 }
 0x772   :  { %v1445_v13 = vsel %vm790_vm3, %v5681_v12, 0.0 }
 0x77c   :  { %1449 = vadd.xlane.f32.xlu0 %v1448_v11 }
 0x780   :  { %1446 = vadd.xlane.f32.xlu1 %v1445_v13 }
 0x7c4   :  { %v1405_v14 = vpop.xlane.xlu0 %1404 }
 0x7c5   :  { %v1423_v15 = vsub.f32 %v1013_v48, %v1405_v14 }
 0x7c7   :  { %v1433_v16 = vmul.f32 1.442695, %v1423_v15 }
 0x7c8   :  { %v1408_v17 = vpop.xlane.xlu0 %1407  ;;  %v1411_v18 = vpop.xlane.xlu1 %1410 }
 0x7c9   :  { %5199 = vpow2.f32 %v1433_v16  ;;  %v1424_v19 = vsub.f32 %v1089_v53, %v1408_v17  ;;  %v1425_v20 = vsub.f32 %v1165_v54, %v1411_v18 }
 0x7cb   :  { %v1435_v21 = vmul.f32 1.442695, %v1424_v19  ;;  %v1437_v23 = vmul.f32 1.442695, %v1425_v20  ;;  %v2124_v19 = vld [vmem:[%s6170_s11] sm:$0xff]  ;;  %v2125_v20 = vld [vmem:[%s6170_s11 + $0x8] sm:$0xff] }
 0x7cc   :  { %v1414_v24 = vpop.xlane.xlu0 %1413  ;;  %v1417_v25 = vpop.xlane.xlu1 %1416 }
 0x7cd   :  { %5201 = vpow2.f32 %v1435_v21  ;;  %v1426_v26 = vsub.f32 %v1241_v59, %v1414_v24  ;;  %v1427_v27 = vsub.f32 %v1317_v60, %v1417_v25  ;;  %v5071_v21 = vpack.c.bf16 %v2125_v20, %v2124_v19  ;;  %v2127_v24 = vld [vmem:[%s6170_s11 + $0x18] sm:$0xff]  ;;  %v4472_v20 = vld [vmem:[%s6173_s14] ss:$0 sm:$0xff] }
 0x7ce   :  { %5203 = vpow2.f32 %v1437_v23  ;;  %v2126_v23 = vld [vmem:[%s6170_s11 + $0x10] sm:$0xff] }
 0x7cf   :  { %v1439_v28 = vmul.f32 1.442695, %v1426_v26  ;;  %v1441_v29 = vmul.f32 1.442695, %v1427_v27  ;;  %v5075_v25 = vpack.c.bf16 %v2127_v24, %v2126_v23 }
 0x7d0   :  { %v1420_v31 = vpop.xlane.xlu0 %1419  ;;  %v1486_v32 = vpop.permute.xlu1 %1485 }
 0x7d1   :  { %5205 = vpow2.f32 %v1439_v28  ;;  %v1428_v33 = vsub.f32 %v1393_v1, %v1420_v31  ;;  %4815 = vmatpush3.msra.mxu0 %v1486_v32 }
 0x7d2   :  { %5207 = vpow2.f32 %v1441_v29  ;;  %4824 = vmatprep.subr.mxu0 %v5313_v22 }
 0x7d3   :  { %v5200_v35 = vpop.eup %5199  ;;  %v1443_v36 = vmul.f32 1.442695, %v1428_v33 }
 0x7d4   :  { %v1562_v37 = vpop.permute.xlu0 %1561  ;;  %v1451_v38 = vsel %vm790_vm3, %v5200_v35, 0.0  ;;  %v1638_v49 = vpop.permute.xlu1 %1637 }
 0x7d5   :  { %5209 = vpow2.f32 %v1443_v36  ;;  %1452 = vadd.xlane.f32.xlu1 %v1451_v38  ;;  %4820 = vmatpush3.msra.mxu1 %v1562_v37 }
 0x7d6   :  { %4829 = vmatprep.subr.mxu1 %v5313_v22 }
 0x7d7   :  { %v5202_v39 = vpop.eup %5201 }
 0x7d8   :  { %v5204_v40 = vpop.eup %5203  ;;  %v1454_v41 = vsel %vm790_vm3, %v5202_v39, 0.0  ;;  %v1714_v52 = vpop.permute.xlu1 %1713 }
 0x7d9   :  { %1455 = vadd.xlane.f32.xlu0 %v1454_v41  ;;  %v1457_v42 = vsel %vm790_vm3, %v5204_v40, 0.0  ;;  %v1790_v53 = vpop.permute.xlu0 %1789 }
 0x7da   :  { %1458 = vadd.xlane.f32.xlu1 %v1457_v42 }
 0x7db   :  { %v5206_v43 = vpop.eup %5205 }
 0x7dc   :  { %v5208_v44 = vpop.eup %5207  ;;  %v1460_v45 = vsel %vm790_vm3, %v5206_v43, 0.0  ;;  %v1866_v54 = vpop.permute.xlu1 %1865 }
 0x7dd   :  { %1461 = vadd.xlane.f32.xlu0 %v1460_v45  ;;  %v1463_v46 = vsel %vm790_vm3, %v5208_v44, 0.0 }
 0x7de   :  { %1464 = vadd.xlane.f32.xlu1 %v1463_v46 }
 0x7df   :  { %v5692_v47 = vpop.eup %5209 }
 0x7e0   :  { %v1466_v48 = vsel %vm790_vm3, %v5692_v47, 0.0 }
 0x7e1   :  { %1467 = vadd.xlane.f32.xlu0 %v1466_v48 }
 0x7ef   :  { %2017 = vrot.lane.b32.xlu1 %v5609_v34, %s5311_s30 }
 0x7f7   :  { %1941 = vrot.lane.b32.xlu0 %v5593_v30, %s5311_s30 }
 0x809   :  { %v1450_v55 = vpop.xlane.xlu0 %1449 }
 0x80a   :  { %5211 = vrcp.f32 %v1450_v55 }
 0x80d   :  { %v1447_v56 = vpop.xlane.xlu1 %1446 }
 0x80e   :  { %5213 = vrcp.f32 %v1447_v56 }
 0x814   :  { %v5212_v57 = vpop.eup %5211 }
 0x815   :  { %v1478_v58 = vmul.f32 %v5212_v57, %v5677_v10 }
 0x817   :  { %4822 = vmatmul.mubr.msk.f32.vlgmr.msra.gmra.mrb[22].mxu1 %vm790_vm3, %v1478_v58 }
 0x818   :  { %v5214_v59 = vpop.eup %5213  ;;  %4830 = vmatpush3.msra.mxu1 %v1714_v52  ;;  %4831 = vmatprep.mubr.msk.f32.mxu1 %vm5314_vm2, %v5313_v22 }
 0x819   :  { %v1477_v30 = vmul.f32 %v5214_v59, %v5681_v12  ;;  %4839 = vmatprep.subr.mxu1 %v5313_v22 }
 0x81b   :  { %4817 = vmatmul.mubr.msk.f32.vlgmr.msra.gmra.mrb[6].mxu0 %vm790_vm3, %v1477_v30 }
 0x81c   :  { %4825 = vmatpush3.msra.mxu0 %v1638_v49  ;;  %4826 = vmatprep.mubr.msk.f32.mxu0 %vm5314_vm2, %v5313_v22 }
 0x81d   :  { %4834 = vmatprep.subr.mxu0 %v5313_v22 }
 0x862   :  { %v1453_v34 = vpop.xlane.xlu1 %1452 }
 0x863   :  { %5215 = vrcp.f32 %v1453_v34 }
 0x866   :  { %v1456_v60 = vpop.xlane.xlu0 %1455 }
 0x867   :  { %5217 = vrcp.f32 %v1456_v60  ;;  %v1459_v61 = vpop.xlane.xlu1 %1458 }
 0x868   :  { %5219 = vrcp.f32 %v1459_v61 }
 0x86a   :  { %v1462_v62 = vpop.xlane.xlu0 %1461 }
 0x86b   :  { %5221 = vrcp.f32 %v1462_v62  ;;  %v1465_v63 = vpop.xlane.xlu1 %1464 }
 0x86c   :  { %5223 = vrcp.f32 %v1465_v63 }
 0x86d   :  { %v5216_v0 = vpop.eup %5215 }
 0x86e   :  { %v1479_v1 = vmul.f32 %v5216_v0, %v5200_v35  ;;  %v1468_v2 = vpop.xlane.xlu0 %1467 }
 0x86f   :  { %5225 = vrcp.f32 %v1468_v2  ;;  %v2018_v12 = vpop.permute.xlu1 %2017 }
 0x870   :  { %4827 = vmatmul.mubr.msk.f32.vlgmr.msra.gmra.mrb[8].mxu0 %vm790_vm3, %v1479_v1 }
 0x871   :  { %v5218_v3 = vpop.eup %5217  ;;  %4835 = vmatpush3.msra.mxu0 %v1790_v53  ;;  %4836 = vmatprep.mubr.msk.f32.mxu0 %vm5314_vm2, %v5313_v22 }
 0x872   :  { %v5220_v4 = vpop.eup %5219  ;;  %v1480_v5 = vmul.f32 %v5218_v3, %v5202_v39  ;;  %4844 = vmatprep.subr.mxu0 %v5313_v22  ;;  %v1942_v7 = vpop.permute.xlu0 %1941 }
 0x873   :  { %v1481_v6 = vmul.f32 %v5220_v4, %v5204_v40 }
 0x874   :  { %4832 = vmatmul.mubr.msk.f32.vlgmr.msra.gmra.mrb[24].mxu1 %vm790_vm3, %v1480_v5  ;;  %v2262_v5 = vld [vmem:[%s6174_s15] sm:$0xff] }
 0x875   :  { %v5222_v8 = vpop.eup %5221  ;;  %4837 = vmatmul.mubr.msk.f32.vlgmr.msra.gmra.mrb[10].mxu0 %vm790_vm3, %v1481_v6  ;;  %4840 = vmatpush3.msra.mxu1 %v1866_v54  ;;  %v4468_v54 = vld [vmem:[%s6171_s12] ss:$0 sm:$0xff]  ;;  %v2263_v6 = vld [vmem:[%s6174_s15 + $0x8] sm:$0xff] }
 0x876   :  { %v5224_v9 = vpop.eup %5223  ;;  %v1482_v10 = vmul.f32 %v5222_v8, %v5206_v43  ;;  %4845 = vmatpush3.msra.mxu0 %v1942_v7  ;;  %4841 = vmatprep.mubr.msk.f32.mxu1 %vm5314_vm2, %v5313_v22  ;;  %v5079_v7 = vpack.c.bf16 %v2263_v6, %v2262_v5  ;;  %v2264_v8 = vld [vmem:[%s6174_s15 + $0x10] sm:$0xff] }
 0x877   :  { %v1483_v11 = vmul.f32 %v5224_v9, %v5208_v44  ;;  %4846 = vmatprep.mubr.msk.f32.mxu0 %vm5314_vm2, %v5313_v22  ;;  %4849 = vmatprep.subr.mxu1 %v5313_v22  ;;  %v2265_v9 = vld [vmem:[%s6174_s15 + $0x18] sm:$0xff] }
 0x878   :  { %4842 = vmatmul.mubr.msk.f32.vlgmr.msra.gmra.mrb[26].mxu1 %vm790_vm3, %v1482_v10  ;;  %5072 = vmatprep.subr.bf16.mxu0 %v5071_v21  ;;  %v5083_v10 = vpack.c.bf16 %v2265_v9, %v2264_v8 }
 0x879   :  { %v5226_v13 = vpop.eup %5225  ;;  %4847 = vmatmul.mubr.msk.f32.vlgmr.msra.gmra.mrb[12].mxu0 %vm790_vm3, %v1483_v11  ;;  %4850 = vmatpush3.msra.mxu1 %v2018_v12 }
 0x87a   :  { %v1484_v14 = vmul.f32 %v5226_v13, %v5692_v47  ;;  %4851 = vmatprep.mubr.msk.f32.mxu1 %vm5314_vm2, %v5313_v22  ;;  %5074 = vmatpush3.bf16.msra.mxu0 %v5071_v21 }
 0x87b   :  { %5076 = vmatprep.subr.bf16.mxu0 %v5075_v25  ;;  %5080 = vmatprep.subr.bf16.mxu1 %v5079_v7 }
 0x87c   :  { %4852 = vmatmul.mubr.msk.f32.vlgmr.msra.gmra.mrb[28].mxu1 %vm790_vm3, %v1484_v14 }
 0x87d   :  { %5082 = vmatpush3.bf16.msra.mxu1 %v5079_v7 }
 0x87e   :  { %5078 = vmatpush3.bf16.msra.mxu0 %v5075_v25  ;;  %5084 = vmatprep.subr.bf16.mxu1 %v5083_v10 }
 0x881   :  { %5086 = vmatpush3.bf16.msra.mxu1 %v5083_v10 }
 0x8ea   :  { %v1633_v15 = vpop.f32.mrb[22].mxu1 }
 0x8eb   :  { %v4823_v16 = vpop.f32.mrb[23].mxu1 }
 0x8ee   :  { %v1557_v17 = vpop.f32.mrb[6].mxu0 }
 0x8ef   :  { %v4818_v18 = vpop.f32.mrb[7].mxu0 }
 0x8f0   :  { %v4471_v18 = vld [vmem:[%s6172_s13] ss:$0 sm:$0xff] }
 0x943   :  { %v1709_v26 = vpop.f32.mrb[8].mxu0 }
 0x944   :  { %2095 = vrot.lane.b32.xlu0 %v1709_v26, %s5318_s7  ;;  %v4828_v27 = vpop.f32.mrb[9].mxu0 }
 0x947   :  { %v1785_v28 = vpop.f32.mrb[24].mxu1 }
 0x948   :  { %v1861_v29 = vpop.f32.mrb[10].mxu0  ;;  %2097 = vrot.lane.b32.xlu1 %v1785_v28, %s5318_s7  ;;  %v4833_v31 = vpop.f32.mrb[25].mxu1  ;;  %v2372_v28 = vld [vmem:[%s6176_s17] sm:$0xff] }
 0x949   :  { %2103 = vrot.lane.b32.xlu0 %v1861_v29, %s6191_s3  ;;  %v4838_v32 = vpop.f32.mrb[11].mxu0  ;;  %v2373_v29 = vld [vmem:[%s6176_s17 + $0x8] sm:$0xff] }
 0x94a   :  { %v5087_v31 = vpack.c.bf16 %v2373_v29, %v2372_v28  ;;  %v2374_v32 = vld [vmem:[%s6176_s17 + $0x10] sm:$0xff] }
 0x94b   :  { %v1937_v33 = vpop.f32.mrb[26].mxu1 }
 0x94c   :  { %v2013_v35 = vpop.f32.mrb[12].mxu0  ;;  %2105 = vrot.lane.b32.xlu1 %v1937_v33, %s6191_s3  ;;  %v4843_v36 = vpop.f32.mrb[27].mxu1  ;;  %5088 = vmatprep.subr.bf16.mxu0 %v5087_v31  ;;  %v2375_v33 = vld [vmem:[%s6176_s17 + $0x18] sm:$0xff] }
 0x94d   :  { %2111 = vrot.lane.b32.xlu0 %v2013_v35, %s6189_s0  ;;  %v4848_v37 = vpop.f32.mrb[13].mxu0  ;;  %v5091_v35 = vpack.c.bf16 %v2375_v33, %v2374_v32  ;;  %v2376_v36 = vld [vmem:[%s6176_s17 + $0x20] sm:$0xff] }
 0x94e   :  { %v2377_v37 = vld [vmem:[%s6176_s17 + $0x28] sm:$0xff]  ;;  %v4481_v33 = vld [vmem:[%s6208_s1 + $0x1] ss:$0 sm:$0xff] }
 0x94f   :  { %v2089_v38 = vpop.f32.mrb[28].mxu1 }
 0x950   :  { %2113 = vrot.lane.b32.xlu1 %v2089_v38, %s6189_s0  ;;  %v4853_v39 = vpop.f32.mrb[29].mxu1  ;;  %v5095_v38 = vpack.c.bf16 %v2377_v37, %v2376_v36 }
 0x951   :  { %v2378_v39 = vld [vmem:[%s6176_s17 + $0x30] sm:$0xff] }
 0x9b6   :  { %v2096_v40 = vpop.permute.xlu0 %2095 }
 0x9b7   :  { %v2117_v43 = vsel %vm790_vm3, %v1557_v17, %v2096_v40  ;;  %v2379_v40 = vld [vmem:[%s6176_s17 + $0x38] sm:$0xff] }
 0x9ba   :  { %v2098_v41 = vpop.permute.xlu1 %2097 }
 0x9bb   :  { %v2104_v42 = vpop.permute.xlu0 %2103  ;;  %v2118_v48 = vsel %vm790_vm3, %v1633_v15, %v2098_v41  ;;  %v5099_v41 = vpack.c.bf16 %v2379_v40, %v2378_v39 }
 0x9bc   :  { %v2120_v45 = vsel %vm2119_vm4, %v2117_v43, %v2104_v42  ;;  %v4473_v42 = vld [vmem:[%s6175_s16] ss:$0 sm:$0xff] }
 0x9be   :  { %v2106_v44 = vpop.permute.xlu1 %2105 }
 0x9bf   :  { %v2112_v46 = vpop.permute.xlu0 %2111  ;;  %v2121_v49 = vsel %vm2119_vm4, %v2118_v48, %v2106_v44 }
 0x9c0   :  { %v2122_v47 = vsel %vm89_vm0, %v2120_v45, %v2112_v46 }
 0x9c1   :  { %4862 = vmatprep.mubr.msk.f32.mxu0 %vm227_vm1, %v2122_v47 }
 0x9c2   :  { %v2114_v52 = vpop.permute.xlu1 %2113 }
 0x9c3   :  { %v2123_v53 = vsel %vm89_vm0, %v2121_v49, %v2114_v52 }
 0x9c4   :  { %4863 = vmatmul.mubr.msk.f32.vlgmr.msra.gmra.mrb[14].mxu0 %vm227_vm1, %v2123_v53 }
 0x9c5   :  { %5090 = vmatpush3.bf16.msra.mxu0 %v5087_v31 }
 0x9c6   :  { %5092 = vmatprep.subr.bf16.mxu0 %v5091_v35 }
 0x9c9   :  { %5094 = vmatpush3.bf16.msra.mxu0 %v5091_v35 }
 0x9ca   :  { %5096 = vmatprep.subr.bf16.mxu0 %v5095_v38 }
 0x9cd   :  { %5098 = vmatpush3.bf16.msra.mxu0 %v5095_v38  ;;  %v4482_v38 = vld [vmem:[%s6167_s8 + $0x1] ss:$0 sm:$0xff] }
 0x9ce   :  { %5100 = vmatprep.subr.bf16.mxu0 %v5099_v41 }
 0x9d1   :  { %5102 = vmatpush3.bf16.msra.mxu0 %v5099_v41 }
 0x9d2   :  { %4916 = vmatprep.subr.mxu0 %v5313_v22 }
 0xa97   :  { %v4864_v55 = vpop.f32.mrb[14].mxu0 }
 0xa98   :  { %v2213_v56 = vadd.f32 %v4864_v55, %v4468_v54  ;;  %v2207_v57 = vpop.f32.mrb[15].mxu0 }
 0xa99   :  { %v2208_v58 = vadd.f32 %v4468_v54, %v2207_v57 }
 0xa9a   :  { %v5757_v59 = vadd.f32 %v2213_v56, %v5524_v50 }
 0xa9b   :  { %v5760_v30 = vadd.f32 %v2208_v58, %v5526_v51 }
 0xa9c   :  { %v2223_v34 = vsel %vm227_vm1, %v5757_v59, 0.0 }
 0xa9d   :  { %2224 = vadd.xlane.f32.xlu1 %v2223_v34  ;;  %v2220_v60 = vsel %vm227_vm1, %v5760_v30, 0.0 }
 0xa9e   :  { %2221 = vadd.xlane.f32.xlu0 %v2220_v60 }
 0xb2a   :  { %v2225_v61 = vpop.xlane.xlu1 %2224 }
 0xb2b   :  { %v2227_v62 = vmul.f32 0.03125, %v2225_v61  ;;  %v2222_v63 = vpop.xlane.xlu0 %2221 }
 0xb2c   :  { %v2226_v0 = vmul.f32 0.03125, %v2222_v63 }
 0xb2d   :  { %v2229_v1 = vsub.f32 %v5757_v59, %v2227_v62 }
 0xb2e   :  { %v2228_v50 = vsub.f32 %v5760_v30, %v2226_v0 }
 0xb2f   :  { %v2231_v3 = vmul.f32 %v2229_v1, %v2229_v1 }
 0xb30   :  { %v2230_v2 = vmul.f32 %v2228_v50, %v2228_v50 }
 0xb31   :  { %v2235_v4 = vsel %vm227_vm1, %v2231_v3, 0.0 }
 0xb32   :  { %v2232_v51 = vsel %vm227_vm1, %v2230_v2, 0.0  ;;  %v4476_v2 = vld [vmem:[%s6177_s18] ss:$0 sm:$0xff] }
 0xb33   :  { %2233 = vadd.xlane.f32.xlu0 %v2232_v51 }
 0xb37   :  { %2236 = vadd.xlane.f32.xlu0 %v2235_v4 }
 0xbc0   :  { %v2234_v11 = vpop.xlane.xlu0 %2233 }
 0xbc1   :  { %v2238_v12 = vmul.f32 0.03125, %v2234_v11 }
 0xbc3   :  { %v2240_v13 = vadd.f32 1e-05, %v2238_v12 }
 0xbc4   :  { %v2237_v14 = vpop.xlane.xlu0 %2236 }
 0xbc5   :  { %5227 = vrsqrt.f32 %v2240_v13  ;;  %v2239_v15 = vmul.f32 0.03125, %v2237_v14 }
 0xbc7   :  { %v2241_v16 = vadd.f32 1e-05, %v2239_v15 }
 0xbc9   :  { %5229 = vrsqrt.f32 %v2241_v16 }
 0xbcf   :  { %v5228_v17 = vpop.eup %5227 }
 0xbd0   :  { %v2244_v19 = vmul.f32 %v5228_v17, %v2228_v50 }
 0xbd2   :  { %v2252_v21 = vmul.f32 %v4471_v18, %v2244_v19  ;;  %v4484_v19 = vld [vmem:[%s6168_s9 + $0x28] sm:$0xff] }
 0xbd3   :  { %v5230_v23 = vpop.eup %5229 }
 0xbd4   :  { %v2245_v24 = vmul.f32 %v5230_v23, %v2229_v1  ;;  %v2260_v25 = vadd.f32 %v4472_v20, %v2252_v21  ;;  %v4485_v21 = vld [vmem:[%s6168_s9 + $0x30] sm:$0xff]  ;;  %v4486_v23 = vld [vmem:[%s6168_s9 + $0x38] sm:$0xff] }
 0xbd6   :  { %v2253_v26 = vmul.f32 %v4471_v18, %v2245_v24  ;;  %4873 = vmatprep.mubr.msk.f32.mxu1 %vm227_vm1, %v2260_v25  ;;  %v4483_v18 = vld [vmem:[%s6168_s9 + $0x20] sm:$0xff]  ;;  %v5107_v24 = vpack.c.bf16 %v4486_v23, %v4485_v21 }
 0xbd8   :  { %v2261_v27 = vadd.f32 %v4472_v20, %v2253_v26  ;;  %v5103_v20 = vpack.c.bf16 %v4484_v19, %v4483_v18 }
 0xbda   :  { %4874 = vmatmul.mubr.msk.f32.vlgmr.msra.gmra.mrb[30].mxu1 %vm227_vm1, %v2261_v27  ;;  %5104 = vmatprep.subr.bf16.mxu1 %v5103_v20 }
 0xbdb   :  { %5106 = vmatpush3.bf16.msra.mxu1 %v5103_v20 }
 0xbdc   :  { %5108 = vmatprep.subr.bf16.mxu1 %v5107_v24 }
 0xbdf   :  { %5110 = vmatpush3.bf16.msra.mxu1 %v5107_v24 }
 0xbe0   :  { %4906 = vmatprep.subr.mxu1 %v5313_v22 }
 0xcad   :  { %v4875_v43 = vpop.f32.mrb[30].mxu1 }
 0xcae   :  { %v2351_v44 = vadd.f32 %v4875_v43, %v4473_v42  ;;  %v2345_v45 = vpop.f32.mrb[31].mxu1  ;;  %v4488_v43 = vld [vmem:[%s6169_s10 + $0x1] ss:$0 sm:$0xff] }
 0xcaf   :  { %v2346_v46 = vadd.f32 %v4473_v42, %v2345_v45 }
 0xcb0   :  { %v2355_v47 = vmul.f32 %v2351_v44, %v2351_v44 }
 0xcb1   :  { %v2354_v48 = vmul.f32 %v2346_v46, %v2346_v46 }
 0xcb2   :  { %v2357_v49 = vmul.f32 %v2355_v47, %v2351_v44 }
 0xcb3   :  { %v2356_v52 = vmul.f32 %v2354_v48, %v2346_v46 }
 0xcb4   :  { %v2359_v53 = vmul.f32 0.044715, %v2357_v49 }
 0xcb5   :  { %v2358_v54 = vmul.f32 0.044715, %v2356_v52 }
 0xcb6   :  { %v2361_v55 = vadd.f32 %v2359_v53, %v2351_v44 }
 0xcb7   :  { %v2360_v56 = vadd.f32 %v2358_v54, %v2346_v46 }
 0xcb8   :  { %v2363_v57 = vmul.f32 0.7978846, %v2361_v55 }
 0xcb9   :  { %v2362_v58 = vmul.f32 0.7978846, %v2360_v56 }
 0xcba   :  { %5231 = vtanh.f32 %v2363_v57 }
 0xcbb   :  { %5233 = vtanh.f32 %v2362_v58 }
 0xcc4   :  { %v5232_v34 = vpop.eup %5231 }
 0xcc5   :  { %v5234_v60 = vpop.eup %5233  ;;  %v2367_v61 = vadd.f32 1.0, %v5232_v34 }
 0xcc6   :  { %v2366_v62 = vadd.f32 1.0, %v5234_v60 }
 0xcc7   :  { %v2369_v63 = vmul.f32 0.5, %v2367_v61 }
 0xcc8   :  { %v2368_v0 = vmul.f32 0.5, %v2366_v62 }
 0xcc9   :  { %v2371_v50 = vmul.f32 %v2369_v63, %v2351_v44 }
 0xcca   :  { %v2370_v1 = vmul.f32 %v2368_v0, %v2346_v46 }
 0xccc   :  { %4892 = vmatprep.mubr.msk.f32.mxu0 %vm2387_vm5, %v2370_v1 }
 0xccd   :  { %4893 = vmatmul.mubr.msk.f32.vlgmr.msra.gmra.mrb[16].mxu0 %vm2387_vm5, %v2371_v50 }
 0xcce   :  { %4918 = vmatprep.mubr.msk.f32.mxu0 %vm5314_vm2, %v5313_v22 }
 0xda0   :  { %v4894_v51 = vpop.f32.mrb[16].mxu0 }
 0xda1   :  { %v2466_v3 = vadd.f32 %v4894_v51, %v4476_v2  ;;  %v2460_v4 = vpop.f32.mrb[17].mxu0 }
 0xda2   :  { %v2461_v5 = vadd.f32 %v4476_v2, %v2460_v4 }
 0xda3   :  { %v5826_v6 = vadd.f32 %v2466_v3, %v5757_v59 }
 0xda4   :  { %v5829_v7 = vadd.f32 %v2461_v5, %v5760_v30 }
 0xda5   :  { %v2478_v8 = vsel %vm227_vm1, %v5826_v6, 0.0 }
 0xda6   :  { %2479 = vadd.xlane.f32.xlu0 %v2478_v8  ;;  %v2475_v9 = vsel %vm227_vm1, %v5829_v7, 0.0 }
 0xda7   :  { %2476 = vadd.xlane.f32.xlu1 %v2475_v9 }
 0xe33   :  { %v2480_v10 = vpop.xlane.xlu0 %2479 }
 0xe34   :  { %v2482_v11 = vmul.f32 0.03125, %v2480_v10  ;;  %v2477_v12 = vpop.xlane.xlu1 %2476 }
 0xe35   :  { %v2481_v13 = vmul.f32 0.03125, %v2477_v12 }
 0xe36   :  { %v2484_v14 = vsub.f32 %v5826_v6, %v2482_v11 }
 0xe37   :  { %v2483_v59 = vsub.f32 %v5829_v7, %v2481_v13 }
 0xe38   :  { %v2486_v15 = vmul.f32 %v2484_v14, %v2484_v14 }
 0xe39   :  { %v2485_v16 = vmul.f32 %v2483_v59, %v2483_v59 }
 0xe3a   :  { %v2490_v30 = vsel %vm227_vm1, %v2486_v15, 0.0 }
 0xe3b   :  { %2491 = vadd.xlane.f32.xlu0 %v2490_v30  ;;  %v2487_v17 = vsel %vm227_vm1, %v2485_v16, 0.0 }
 0xe3c   :  { %2488 = vadd.xlane.f32.xlu1 %v2487_v17 }
 0xec8   :  { %v2492_v25 = vpop.xlane.xlu0 %2491 }
 0xec9   :  { %v2494_v26 = vmul.f32 0.03125, %v2492_v25  ;;  %v2489_v27 = vpop.xlane.xlu1 %2488 }
 0xeca   :  { %v2493_v28 = vmul.f32 0.03125, %v2489_v27 }
 0xecb   :  { %v2496_v29 = vadd.f32 1e-05, %v2494_v26 }
 0xecc   :  { %v2495_v31 = vadd.f32 1e-05, %v2493_v28 }
 0xecd   :  { %5235 = vrsqrt.f32 %v2496_v29 }
 0xece   :  { %5237 = vrsqrt.f32 %v2495_v31 }
 0xed7   :  { %v5236_v32 = vpop.eup %5235 }
 0xed8   :  { %v5238_v35 = vpop.eup %5237  ;;  %v2500_v36 = vmul.f32 %v5236_v32, %v2484_v14 }
 0xed9   :  { %v2499_v37 = vmul.f32 %v5238_v35, %v2483_v59 }
 0xeda   :  { %v2508_v39 = vmul.f32 %v4481_v33, %v2500_v36 }
 0xedb   :  { %v2507_v40 = vmul.f32 %v4481_v33, %v2499_v37 }
 0xedc   :  { %v2516_v42 = vadd.f32 %v4482_v38, %v2508_v39 }
 0xedd   :  { %v2515_v41 = vadd.f32 %v4482_v38, %v2507_v40 }
 0xedf   :  { %4903 = vmatprep.mubr.msk.f32.mxu1 %vm227_vm1, %v2515_v41 }
 0xee0   :  { %4904 = vmatmul.mubr.msk.f32.vlgmr.msra.gmra.mrb[32].mxu1 %vm227_vm1, %v2516_v42 }
 0xee1   :  { %4908 = vmatprep.mubr.msk.f32.mxu1 %vm5314_vm2, %v5313_v22 }
 0xfb3   :  { %v4905_v44 = vpop.f32.mrb[32].mxu1 }
 0xfb4   :  { %v5865_v45 = vadd.f32 %v4905_v44, %v4488_v43  ;;  %v2602_v46 = vpop.f32.mrb[33].mxu1 }
 0xfb5   :  { %v5867_v47 = vadd.f32 %v4488_v43, %v2602_v46 }
 0xfb6   :  { %2615 = vrot.lane.b32.xlu0 %v5865_v45, %s5315_s2 }
 0xfb7   :  { %2613 = vrot.lane.b32.xlu1 %v5867_v47, %s5315_s2 }
 0xfba   :  { %2621 = vrot.lane.b32.xlu0 %v5867_v47, %s5316_s28 }
 0xfbb   :  { %2617 = vrot.lane.b32.xlu1 %v5867_v47, %s5317_s29 }
 0xfbe   :  { %2625 = vrot.lane.b32.xlu0 %v5867_v47, %s5312_s24 }
 0xfbf   :  { %2619 = vrot.lane.b32.xlu1 %v5865_v45, %s5317_s29 }
 0xfc3   :  { %2623 = vrot.lane.b32.xlu1 %v5865_v45, %s5316_s28  ;;  %s5321_s28 = smov [#allocation2]  }
 0xfc7   :  { %2701 = vrot.lane.b32.xlu1 %v5865_v45, %s5312_s24 }
0x1028   :  { %v5885_v48 = vpop.permute.xlu0 %2615 }
0x1029   :  { %2853 = vrot.lane.b32.xlu1 %v5885_v48, %s5312_s24  ;;  %v5889_v49 = vpop.permute.xlu1 %2613 }
0x102a   :  { %2777 = vrot.lane.b32.xlu0 %v5889_v49, %s5312_s24 }
0x102c   :  { %v5893_v52 = vpop.permute.xlu0 %2621 }
0x102d   :  { %v5895_v53 = vpop.permute.xlu1 %2617 }
0x102e   :  { %2929 = vrot.lane.b32.xlu0 %v5895_v53, %s5312_s24 }
0x1030   :  { %v2626_v54 = vpop.permute.xlu0 %2625 }
0x1031   :  { %4907 = vmatpush3.xpose.msk.msra.mxu1 %vm790_vm3, %v2626_v54  ;;  %v5900_v55 = vpop.permute.xlu1 %2619 }
0x1032   :  { %3081 = vrot.lane.b32.xlu0 %v5893_v52, %s5312_s24  ;;  %3005 = vrot.lane.b32.xlu1 %v5900_v55, %s5312_s24 }
0x1033   :  { %4911 = vmatprep.subr.mxu1 %v5313_v22 }
0x1034   :  { %4909 = vmatmul.mubr.msk.f32.vlgmr.msra.gmra.mrb[34].mxu1 %vm790_vm3, %v5867_v47 }
0x1035   :  { %v5909_v56 = vpop.permute.xlu1 %2623  ;;  %4913 = vmatprep.mubr.msk.f32.mxu1 %vm5314_vm2, %v5313_v22 }
0x1036   :  { %3157 = vrot.lane.b32.xlu1 %v5909_v56, %s5312_s24 }
0x1039   :  { %v2702_v57 = vpop.permute.xlu1 %2701 }
0x103a   :  { %4912 = vmatpush3.xpose.msk.msra.mxu1 %vm790_vm3, %v2702_v57 }
0x103b   :  { %4921 = vmatprep.subr.mxu1 %v5313_v22 }
0x103d   :  { %4914 = vmatmul.mubr.msk.f32.vlgmr.msra.gmra.mrb[36].mxu1 %vm790_vm3, %v5865_v45 }
0x103e   :  { %4923 = vmatprep.mubr.msk.f32.mxu1 %vm5314_vm2, %v5313_v22 }
0x109b   :  { %v2854_v58 = vpop.permute.xlu1 %2853 }
0x109c   :  { %v2778_v34 = vpop.permute.xlu0 %2777  ;;  %4922 = vmatpush3.xpose.msk.msra.mxu1 %vm790_vm3, %v2854_v58 }
0x109d   :  { %4917 = vmatpush3.xpose.msk.msra.mxu0 %vm790_vm3, %v2778_v34  ;;  %4931 = vmatprep.subr.mxu1 %v5313_v22 }
0x109e   :  { %4926 = vmatprep.subr.mxu0 %v5313_v22 }
0x109f   :  { %4924 = vmatmul.mubr.msk.f32.vlgmr.msra.gmra.mrb[38].mxu1 %vm790_vm3, %v5885_v48 }
0x10a0   :  { %4919 = vmatmul.mubr.msk.f32.vlgmr.msra.gmra.mrb[18].mxu0 %vm790_vm3, %v5889_v49  ;;  %v2930_v60 = vpop.permute.xlu0 %2929  ;;  %4933 = vmatprep.mubr.msk.f32.mxu1 %vm5314_vm2, %v5313_v22 }
0x10a1   :  { %4927 = vmatpush3.xpose.msk.msra.mxu0 %vm790_vm3, %v2930_v60  ;;  %4928 = vmatprep.mubr.msk.f32.mxu0 %vm5314_vm2, %v5313_v22 }
0x10a2   :  { %4936 = vmatprep.subr.mxu0 %v5313_v22 }
0x10a4   :  { %4929 = vmatmul.mubr.msk.f32.vlgmr.msra.gmra.mrb[20].mxu0 %vm790_vm3, %v5895_v53  ;;  %v3082_v61 = vpop.permute.xlu0 %3081  ;;  %v3006_v62 = vpop.permute.xlu1 %3005 }
0x10a5   :  { %4932 = vmatpush3.xpose.msk.msra.mxu1 %vm790_vm3, %v3006_v62  ;;  %4937 = vmatpush3.xpose.msk.msra.mxu0 %vm790_vm3, %v3082_v61 }
0x10a6   :  { %4938 = vmatprep.mubr.msk.f32.mxu0 %vm5314_vm2, %v5313_v22  ;;  %4941 = vmatprep.subr.mxu1 %v5313_v22 }
0x10a7   :  { %4946 = vmatprep.subr.mxu0 %v5313_v22 }
0x10a8   :  { %4934 = vmatmul.mubr.msk.f32.vlgmr.msra.gmra.mrb[40].mxu1 %vm790_vm3, %v5900_v55  ;;  %4939 = vmatmul.mubr.msk.f32.vlgmr.msra.gmra.mrb[22].mxu0 %vm790_vm3, %v5893_v52  ;;  %v3158_v63 = vpop.permute.xlu1 %3157 }
0x10a9   :  { %4942 = vmatpush3.xpose.msk.msra.mxu1 %vm790_vm3, %v3158_v63  ;;  %4943 = vmatprep.mubr.msk.f32.mxu1 %vm5314_vm2, %v5313_v22 }
0x10aa   :  { %4951 = vmatprep.subr.mxu1 %v5313_v22  ;;  %4948 = vmatprep.mubr.msk.f32.mxu0 %vm5314_vm2, %v5313_v22 }
0x10ac   :  { %4944 = vmatmul.mubr.msk.f32.vlgmr.msra.gmra.mrb[42].mxu1 %vm790_vm3, %v5909_v56 }
0x10ad   :  { %4953 = vmatprep.mubr.msk.f32.mxu1 %vm5314_vm2, %v5313_v22 }
0x1107   :  { %v2697_v0 = vpop.f32.mrb[34].mxu1 }
0x1108   :  { %v4910_v1 = vpop.f32.mrb[35].mxu1  ;;  %v3233_v50 = vsel %vm790_vm3, %v2697_v0, -inf }
0x1109   :  { %3234 = vmax.xlane.f32.xlu0 %v3233_v50 }
0x1110   :  { %v2773_v2 = vpop.f32.mrb[36].mxu1 }
0x1111   :  { %v4915_v51 = vpop.f32.mrb[37].mxu1  ;;  %v3236_v3 = vsel %vm790_vm3, %v2773_v2, -inf }
0x1112   :  { %3237 = vmax.xlane.f32.xlu1 %v3236_v3 }
0x1172   :  { %v2925_v4 = vpop.f32.mrb[38].mxu1 }
0x1173   :  { %v2849_v5 = vpop.f32.mrb[18].mxu0  ;;  %v4925_v8 = vpop.f32.mrb[39].mxu1  ;;  %v3242_v14 = vsel %vm790_vm3, %v2925_v4, -inf }
0x1174   :  { %v4920_v9 = vpop.f32.mrb[19].mxu0  ;;  %v3239_v10 = vsel %vm790_vm3, %v2849_v5, -inf }
0x1175   :  { %3240 = vmax.xlane.f32.xlu0 %v3239_v10 }
0x1177   :  { %v3001_v11 = vpop.f32.mrb[20].mxu0 }
0x1178   :  { %v4930_v12 = vpop.f32.mrb[21].mxu0  ;;  %v3245_v13 = vsel %vm790_vm3, %v3001_v11, -inf }
0x1179   :  { %3246 = vmax.xlane.f32.xlu1 %v3245_v13  ;;  %3243 = vmax.xlane.f32.xlu0 %v3242_v14 }
0x117b   :  { %v3077_v59 = vpop.f32.mrb[40].mxu1  ;;  %v3153_v15 = vpop.f32.mrb[22].mxu0 }
0x117c   :  { %v4935_v16 = vpop.f32.mrb[41].mxu1  ;;  %v4940_v30 = vpop.f32.mrb[23].mxu0  ;;  %v3251_v17 = vsel %vm790_vm3, %v3153_v15, -inf  ;;  %v3248_v18 = vsel %vm790_vm3, %v3077_v59, -inf }
0x117d   :  { %3252 = vmax.xlane.f32.xlu1 %v3251_v17  ;;  %3249 = vmax.xlane.f32.xlu0 %v3248_v18 }
0x117f   :  { %v3229_v19 = vpop.f32.mrb[42].mxu1 }
0x1180   :  { %v4945_v20 = vpop.f32.mrb[43].mxu1  ;;  %v3254_v21 = vsel %vm790_vm3, %v3229_v19, -inf }
0x1181   :  { %3255 = vmax.xlane.f32.xlu0 %v3254_v21 }
0x118e   :  { %3321 = vrot.lane.b32.xlu1 %v5867_v47, %s5311_s30 }
0x1192   :  { %3473 = vrot.lane.b32.xlu1 %v5889_v49, %s5311_s30 }
0x1196   :  { %3549 = vrot.lane.b32.xlu1 %v5885_v48, %s5311_s30  ;;  %v3235_v25 = vpop.xlane.xlu0 %3234 }
0x1197   :  { %3397 = vrot.lane.b32.xlu0 %v5865_v45, %s5311_s30  ;;  %v3257_v26 = vsub.f32 %v2697_v0, %v3235_v25 }
0x1199   :  { %v3265_v28 = vmul.f32 1.442695, %v3257_v26 }
0x119a   :  { %3701 = vrot.lane.b32.xlu1 %v5900_v55, %s5311_s30 }
0x119b   :  { %3625 = vrot.lane.b32.xlu0 %v5895_v53, %s5311_s30 }
0x119f   :  { %v3238_v23 = vpop.xlane.xlu1 %3237 }
0x11a0   :  { %v3258_v24 = vsub.f32 %v2773_v2, %v3238_v23 }
0x11a2   :  { %v3267_v27 = vmul.f32 1.442695, %v3258_v24 }
0x11a4   :  { %5239 = vpow2.f32 %v3267_v27 }
0x11a5   :  { %5241 = vpow2.f32 %v3265_v28 }
0x11ae   :  { %v5977_v29 = vpop.eup %5239 }
0x11af   :  { %v3284_v31 = vsel %vm790_vm3, %v5977_v29, 0.0  ;;  %v5981_v32 = vpop.eup %5241 }
0x11b0   :  { %v3281_v33 = vsel %vm790_vm3, %v5981_v32, 0.0 }
0x11ba   :  { %3285 = vadd.xlane.f32.xlu0 %v3284_v31 }
0x11be   :  { %3282 = vadd.xlane.f32.xlu1 %v3281_v33 }
0x1202   :  { %v3241_v35 = vpop.xlane.xlu0 %3240 }
0x1203   :  { %v3259_v36 = vsub.f32 %v2849_v5, %v3241_v35 }
0x1205   :  { %v3269_v37 = vmul.f32 1.442695, %v3259_v36 }
0x1206   :  { %v3244_v38 = vpop.xlane.xlu0 %3243  ;;  %v3247_v39 = vpop.xlane.xlu1 %3246 }
0x1207   :  { %5243 = vpow2.f32 %v3269_v37  ;;  %v3260_v40 = vsub.f32 %v2925_v4, %v3244_v38  ;;  %v3261_v41 = vsub.f32 %v3001_v11, %v3247_v39 }
0x1209   :  { %v3271_v42 = vmul.f32 1.442695, %v3260_v40  ;;  %v3273_v43 = vmul.f32 1.442695, %v3261_v41  ;;  %v4515_v40 = vld [vmem:[%s6170_s11 + $0x20] sm:$0xff]  ;;  %v4516_v41 = vld [vmem:[%s6170_s11 + $0x28] sm:$0xff] }
0x120a   :  { %v3250_v44 = vpop.xlane.xlu0 %3249  ;;  %v3253_v45 = vpop.xlane.xlu1 %3252 }
0x120b   :  { %5245 = vpow2.f32 %v3271_v42  ;;  %v3262_v46 = vsub.f32 %v3077_v59, %v3250_v44  ;;  %v3263_v47 = vsub.f32 %v3153_v15, %v3253_v45  ;;  %v5111_v42 = vpack.c.bf16 %v4516_v41, %v4515_v40  ;;  %v4526_v40 = vld [vmem:[%s6173_s14 + $0x1] ss:$0 sm:$0xff] }
0x120c   :  { %5247 = vpow2.f32 %v3273_v43  ;;  %v4518_v43 = vld [vmem:[%s6170_s11 + $0x38] sm:$0xff] }
0x120d   :  { %v3275_v48 = vmul.f32 1.442695, %v3262_v46  ;;  %v3277_v49 = vmul.f32 1.442695, %v3263_v47 }
0x120e   :  { %v3256_v53 = vpop.xlane.xlu0 %3255  ;;  %v3322_v54 = vpop.permute.xlu1 %3321 }
0x120f   :  { %5249 = vpow2.f32 %v3275_v48  ;;  %v3264_v55 = vsub.f32 %v3229_v19, %v3256_v53  ;;  %4947 = vmatpush3.msra.mxu0 %v3322_v54 }
0x1210   :  { %5251 = vpow2.f32 %v3277_v49  ;;  %4956 = vmatprep.subr.mxu0 %v5313_v22 }
0x1211   :  { %v5244_v57 = vpop.eup %5243  ;;  %v3279_v58 = vmul.f32 1.442695, %v3264_v55 }
0x1212   :  { %v3398_v34 = vpop.permute.xlu0 %3397  ;;  %v3287_v60 = vsel %vm790_vm3, %v5244_v57, 0.0  ;;  %v3474_v5 = vpop.permute.xlu1 %3473 }
0x1213   :  { %5253 = vpow2.f32 %v3279_v58  ;;  %3288 = vadd.xlane.f32.xlu1 %v3287_v60  ;;  %4952 = vmatpush3.msra.mxu1 %v3398_v34 }
0x1214   :  { %4961 = vmatprep.subr.mxu1 %v5313_v22 }
0x1215   :  { %v5246_v61 = vpop.eup %5245 }
0x1216   :  { %v5248_v62 = vpop.eup %5247  ;;  %v3290_v63 = vsel %vm790_vm3, %v5246_v61, 0.0  ;;  %v3550_v8 = vpop.permute.xlu1 %3549 }
0x1217   :  { %3291 = vadd.xlane.f32.xlu0 %v3290_v63  ;;  %v3293_v0 = vsel %vm790_vm3, %v5248_v62, 0.0  ;;  %v3626_v9 = vpop.permute.xlu0 %3625 }
0x1218   :  { %3294 = vadd.xlane.f32.xlu1 %v3293_v0 }
0x1219   :  { %v5250_v1 = vpop.eup %5249 }
0x121a   :  { %v5252_v50 = vpop.eup %5251  ;;  %v3296_v2 = vsel %vm790_vm3, %v5250_v1, 0.0  ;;  %v3702_v10 = vpop.permute.xlu1 %3701 }
0x121b   :  { %3297 = vadd.xlane.f32.xlu0 %v3296_v2  ;;  %v3299_v51 = vsel %vm790_vm3, %v5252_v50, 0.0 }
0x121c   :  { %3300 = vadd.xlane.f32.xlu1 %v3299_v51 }
0x121d   :  { %v5992_v3 = vpop.eup %5253 }
0x121e   :  { %v3302_v4 = vsel %vm790_vm3, %v5992_v3, 0.0 }
0x121f   :  { %3303 = vadd.xlane.f32.xlu0 %v3302_v4 }
0x122d   :  { %3853 = vrot.lane.b32.xlu1 %v5909_v56, %s5311_s30 }
0x1235   :  { %3777 = vrot.lane.b32.xlu0 %v5893_v52, %s5311_s30 }
0x1247   :  { %v3286_v11 = vpop.xlane.xlu0 %3285 }
0x1248   :  { %5255 = vrcp.f32 %v3286_v11 }
0x124b   :  { %v3283_v12 = vpop.xlane.xlu1 %3282 }
0x124c   :  { %5257 = vrcp.f32 %v3283_v12 }
0x1252   :  { %v5256_v13 = vpop.eup %5255 }
0x1253   :  { %v3314_v14 = vmul.f32 %v5256_v13, %v5977_v29 }
0x1255   :  { %4954 = vmatmul.mubr.msk.f32.vlgmr.msra.gmra.mrb[44].mxu1 %vm790_vm3, %v3314_v14 }
0x1256   :  { %v5258_v59 = vpop.eup %5257  ;;  %4962 = vmatpush3.msra.mxu1 %v3550_v8  ;;  %4963 = vmatprep.mubr.msk.f32.mxu1 %vm5314_vm2, %v5313_v22 }
0x1257   :  { %v3313_v52 = vmul.f32 %v5258_v59, %v5981_v32  ;;  %4971 = vmatprep.subr.mxu1 %v5313_v22 }
0x1259   :  { %4949 = vmatmul.mubr.msk.f32.vlgmr.msra.gmra.mrb[24].mxu0 %vm790_vm3, %v3313_v52 }
0x125a   :  { %4957 = vmatpush3.msra.mxu0 %v3474_v5  ;;  %4958 = vmatprep.mubr.msk.f32.mxu0 %vm5314_vm2, %v5313_v22 }
0x125b   :  { %4966 = vmatprep.subr.mxu0 %v5313_v22 }
0x12a0   :  { %v3289_v56 = vpop.xlane.xlu1 %3288 }
0x12a1   :  { %5259 = vrcp.f32 %v3289_v56 }
0x12a4   :  { %v3292_v15 = vpop.xlane.xlu0 %3291 }
0x12a5   :  { %5261 = vrcp.f32 %v3292_v15  ;;  %v3295_v16 = vpop.xlane.xlu1 %3294 }
0x12a6   :  { %5263 = vrcp.f32 %v3295_v16 }
0x12a8   :  { %v3298_v30 = vpop.xlane.xlu0 %3297 }
0x12a9   :  { %5265 = vrcp.f32 %v3298_v30  ;;  %v3301_v17 = vpop.xlane.xlu1 %3300 }
0x12aa   :  { %5267 = vrcp.f32 %v3301_v17 }
0x12ab   :  { %v5260_v18 = vpop.eup %5259 }
0x12ac   :  { %v3315_v19 = vmul.f32 %v5260_v18, %v5244_v57  ;;  %v3304_v20 = vpop.xlane.xlu0 %3303 }
0x12ad   :  { %5269 = vrcp.f32 %v3304_v20  ;;  %v3854_v32 = vpop.permute.xlu1 %3853 }
0x12ae   :  { %4959 = vmatmul.mubr.msk.f32.vlgmr.msra.gmra.mrb[26].mxu0 %vm790_vm3, %v3315_v19 }
0x12af   :  { %v5262_v21 = vpop.eup %5261  ;;  %4967 = vmatpush3.msra.mxu0 %v3626_v9  ;;  %4968 = vmatprep.mubr.msk.f32.mxu0 %vm5314_vm2, %v5313_v22  ;;  %v4520_v9 = vld [vmem:[%s6171_s12 + $0x1] ss:$0 sm:$0xff] }
0x12b0   :  { %v5264_v23 = vpop.eup %5263  ;;  %v3316_v24 = vmul.f32 %v5262_v21, %v5246_v61  ;;  %4976 = vmatprep.subr.mxu0 %v5313_v22  ;;  %v3778_v26 = vpop.permute.xlu0 %3777 }
0x12b1   :  { %v3317_v25 = vmul.f32 %v5264_v23, %v5248_v62  ;;  %v4527_v23 = vld [vmem:[%s6174_s15 + $0x20] sm:$0xff] }
0x12b2   :  { %4964 = vmatmul.mubr.msk.f32.vlgmr.msra.gmra.mrb[46].mxu1 %vm790_vm3, %v3316_v24  ;;  %v4528_v24 = vld [vmem:[%s6174_s15 + $0x28] sm:$0xff] }
0x12b3   :  { %v5266_v27 = vpop.eup %5265  ;;  %4969 = vmatmul.mubr.msk.f32.vlgmr.msra.gmra.mrb[28].mxu0 %vm790_vm3, %v3317_v25  ;;  %4972 = vmatpush3.msra.mxu1 %v3702_v10  ;;  %v5119_v25 = vpack.c.bf16 %v4528_v24, %v4527_v23 }
0x12b4   :  { %v5268_v28 = vpop.eup %5267  ;;  %v3318_v29 = vmul.f32 %v5266_v27, %v5250_v1  ;;  %4977 = vmatpush3.msra.mxu0 %v3778_v26  ;;  %4973 = vmatprep.mubr.msk.f32.mxu1 %vm5314_vm2, %v5313_v22  ;;  %v4529_v26 = vld [vmem:[%s6174_s15 + $0x30] sm:$0xff]  ;;  %v4530_v27 = vld [vmem:[%s6174_s15 + $0x38] sm:$0xff] }
0x12b5   :  { %v3319_v31 = vmul.f32 %v5268_v28, %v5252_v50  ;;  %4978 = vmatprep.mubr.msk.f32.mxu0 %vm5314_vm2, %v5313_v22  ;;  %4981 = vmatprep.subr.mxu1 %v5313_v22  ;;  %v5123_v28 = vpack.c.bf16 %v4530_v27, %v4529_v26 }
0x12b6   :  { %4974 = vmatmul.mubr.msk.f32.vlgmr.msra.gmra.mrb[48].mxu1 %vm790_vm3, %v3318_v29  ;;  %5112 = vmatprep.subr.bf16.mxu0 %v5111_v42 }
0x12b7   :  { %v5270_v33 = vpop.eup %5269  ;;  %4979 = vmatmul.mubr.msk.f32.vlgmr.msra.gmra.mrb[30].mxu0 %vm790_vm3, %v3319_v31  ;;  %4982 = vmatpush3.msra.mxu1 %v3854_v32 }
0x12b8   :  { %v3320_v35 = vmul.f32 %v5270_v33, %v5992_v3  ;;  %4983 = vmatprep.mubr.msk.f32.mxu1 %vm5314_vm2, %v5313_v22  ;;  %5114 = vmatpush3.bf16.msra.mxu0 %v5111_v42  ;;  %v4517_v22 = vld [vmem:[%s6170_s11 + $0x30] sm:$0xff]  ;;  %s6210_s11 = smov 24  }
0x12b9   :  { %v5115_v44 = vpack.c.bf16 %v4518_v43, %v4517_v22  ;;  %5120 = vmatprep.subr.bf16.mxu1 %v5119_v25 }
0x12ba   :  { %4984 = vmatmul.mubr.msk.f32.vlgmr.msra.gmra.mrb[50].mxu1 %vm790_vm3, %v3320_v35 }
0x12bb   :  { %5116 = vmatprep.subr.bf16.mxu0 %v5115_v44  ;;  %5122 = vmatpush3.bf16.msra.mxu1 %v5119_v25 }
0x12bc   :  { %5118 = vmatpush3.bf16.msra.mxu0 %v5115_v44  ;;  %5124 = vmatprep.subr.bf16.mxu1 %v5123_v28 }
0x12bf   :  { %5126 = vmatpush3.bf16.msra.mxu1 %v5123_v28 }
0x1328   :  { %v3469_v36 = vpop.f32.mrb[44].mxu1 }
0x1329   :  { %v4955_v37 = vpop.f32.mrb[45].mxu1 }
0x132c   :  { %v3393_v38 = vpop.f32.mrb[24].mxu0 }
0x132d   :  { %v4950_v39 = vpop.f32.mrb[25].mxu0 }
0x1381   :  { %v3545_v45 = vpop.f32.mrb[26].mxu0 }
0x1382   :  { %3931 = vrot.lane.b32.xlu0 %v3545_v45, %s5318_s7  ;;  %v4960_v46 = vpop.f32.mrb[27].mxu0 }
0x1383   :  { %v4535_v46 = vld [vmem:[%s6176_s17 + $0x40] sm:$0xff] }
0x1385   :  { %v3621_v47 = vpop.f32.mrb[46].mxu1 }
0x1386   :  { %v3697_v48 = vpop.f32.mrb[28].mxu0  ;;  %3933 = vrot.lane.b32.xlu1 %v3621_v47, %s5318_s7  ;;  %v4965_v49 = vpop.f32.mrb[47].mxu1  ;;  %v4536_v47 = vld [vmem:[%s6176_s17 + $0x48] sm:$0xff] }
0x1387   :  { %3939 = vrot.lane.b32.xlu0 %v3697_v48, %s6209_s27  ;;  %v4970_v53 = vpop.f32.mrb[29].mxu0  ;;  %v5127_v48 = vpack.c.bf16 %v4536_v47, %v4535_v46  ;;  %v4537_v49 = vld [vmem:[%s6176_s17 + $0x50] sm:$0xff]  ;;  %v4548_v46 = vld [vmem:[%s6179_s20] ss:$0 sm:$0xff] }
0x1388   :  { %v4538_v53 = vld [vmem:[%s6176_s17 + $0x58] sm:$0xff] }
0x1389   :  { %v3773_v54 = vpop.f32.mrb[48].mxu1  ;;  %5128 = vmatprep.subr.bf16.mxu0 %v5127_v48 }
0x138a   :  { %v3849_v55 = vpop.f32.mrb[30].mxu0  ;;  %3941 = vrot.lane.b32.xlu1 %v3773_v54, %s6209_s27  ;;  %v4975_v57 = vpop.f32.mrb[49].mxu1  ;;  %v5131_v54 = vpack.c.bf16 %v4538_v53, %v4537_v49 }
0x138b   :  { %3947 = vrot.lane.b32.xlu0 %v3849_v55, %s6210_s11  ;;  %v4980_v58 = vpop.f32.mrb[31].mxu0  ;;  %v4539_v55 = vld [vmem:[%s6176_s17 + $0x60] sm:$0xff]  ;;  %v4540_v57 = vld [vmem:[%s6176_s17 + $0x68] sm:$0xff] }
0x138c   :  { %v5135_v58 = vpack.c.bf16 %v4540_v57, %v4539_v55 }
0x138d   :  { %v3925_v34 = vpop.f32.mrb[50].mxu1 }
0x138e   :  { %3949 = vrot.lane.b32.xlu1 %v3925_v34, %s6210_s11  ;;  %v4985_v60 = vpop.f32.mrb[51].mxu1  ;;  %v4541_v34 = vld [vmem:[%s6176_s17 + $0x70] sm:$0xff] }
0x138f   :  { %v4542_v60 = vld [vmem:[%s6176_s17 + $0x78] sm:$0xff] }
0x13f4   :  { %v3932_v61 = vpop.permute.xlu0 %3931 }
0x13f5   :  { %v3953_v0 = vsel %vm790_vm3, %v3393_v38, %v3932_v61  ;;  %v4525_v38 = vld [vmem:[%s6172_s13 + $0x1] ss:$0 sm:$0xff]  ;;  %v5139_v61 = vpack.c.bf16 %v4542_v60, %v4541_v34  ;;  %s4408_s13 = sshll.u32 %s5321_s28, 4  ;;  %s4409_s13 = int_to_ptr.vmem [resolvable:$true] %s4408_s13 }
0x13f6   :  { %s5287_s29 = scalar_lea.vmem %s4409_s13, 256  ;;  %p5292_p1 = scmp.lt.s32.totalorder %s4409_s13, %s4409_s13 }
0x13f7   :  { %p5288_p0 = scmp.ne.s32.totalorder %s4409_s13, %s5287_s29  ;;  %p5293_p2 = scmp.lt.s32.totalorder %s5287_s29, %s5287_s29 }
0x13f8   :  { %v3934_v62 = vpop.permute.xlu1 %3933 }
0x13f9   :  { %v3940_v63 = vpop.permute.xlu0 %3939  ;;  %v3954_v3 = vsel %vm790_vm3, %v3469_v36, %v3934_v62  ;;  %v4532_v62 = vld [vmem:[%s6175_s16 + $0x1] ss:$0 sm:$0xff]  ;;  %p5294_p3 = por %p5293_p2, %p5292_p1 }
0x13fa   :  { %v3955_v50 = vsel %vm2119_vm4, %v3953_v0, %v3940_v63 }
0x13fb   :  { %p5295_p4 = pnand %p5294_p3, %p5288_p0 }
0x13fc   :  { %v3942_v1 = vpop.permute.xlu1 %3941 }
0x13fd   :  { %v3948_v2 = vpop.permute.xlu0 %3947  ;;  %v3956_v4 = vsel %vm2119_vm4, %v3954_v3, %v3942_v1 }
0x13fe   :  { %v3957_v51 = vsel %vm89_vm0, %v3955_v50, %v3948_v2 }
0x13ff   :  { %4994 = vmatprep.mubr.msk.f32.mxu0 %vm227_vm1, %v3957_v51 }
0x1400   :  { %v3950_v5 = vpop.permute.xlu1 %3949 }
0x1401   :  { %v3958_v8 = vsel %vm89_vm0, %v3956_v4, %v3950_v5 }
0x1402   :  { %4995 = vmatmul.mubr.msk.f32.vlgmr.msra.gmra.mrb[32].mxu0 %vm227_vm1, %v3958_v8 }
0x1403   :  { %5130 = vmatpush3.bf16.msra.mxu0 %v5127_v48 }
0x1404   :  { %5132 = vmatprep.subr.bf16.mxu0 %v5131_v54 }
0x1407   :  { %5134 = vmatpush3.bf16.msra.mxu0 %v5131_v54 }
0x1408   :  { %5136 = vmatprep.subr.bf16.mxu0 %v5135_v58 }
0x140b   :  { %5138 = vmatpush3.bf16.msra.mxu0 %v5135_v58 }
0x140c   :  { %5140 = vmatprep.subr.bf16.mxu0 %v5139_v61 }
0x140f   :  { %5142 = vmatpush3.bf16.msra.mxu0 %v5139_v61 }
0x14d5   :  { %v4996_v10 = vpop.f32.mrb[32].mxu0 }
0x14d6   :  { %v4050_v11 = vadd.f32 %v4996_v10, %v4520_v9  ;;  %v4044_v12 = vpop.f32.mrb[33].mxu0 }
0x14d7   :  { %v4045_v13 = vadd.f32 %v4520_v9, %v4044_v12 }
0x14d8   :  { %v6057_v14 = vadd.f32 %v4050_v11, %v5826_v6 }
0x14d9   :  { %v6060_v59 = vadd.f32 %v4045_v13, %v5829_v7 }
0x14da   :  { %v4062_v52 = vsel %vm227_vm1, %v6057_v14, 0.0 }
0x14db   :  { %4063 = vadd.xlane.f32.xlu1 %v4062_v52  ;;  %v4059_v56 = vsel %vm227_vm1, %v6060_v59, 0.0 }
0x14dc   :  { %4060 = vadd.xlane.f32.xlu0 %v4059_v56 }
0x1568   :  { %v4064_v15 = vpop.xlane.xlu1 %4063 }
0x1569   :  { %v4066_v16 = vmul.f32 0.03125, %v4064_v15  ;;  %v4061_v30 = vpop.xlane.xlu0 %4060 }
0x156a   :  { %v4065_v17 = vmul.f32 0.03125, %v4061_v30 }
0x156b   :  { %v4068_v18 = vsub.f32 %v6057_v14, %v4066_v16 }
0x156c   :  { %v4067_v6 = vsub.f32 %v6060_v59, %v4065_v17 }
0x156d   :  { %v4070_v20 = vmul.f32 %v4068_v18, %v4068_v18 }
0x156e   :  { %v4069_v19 = vmul.f32 %v4067_v6, %v4067_v6 }
0x156f   :  { %v4074_v21 = vsel %vm227_vm1, %v4070_v20, 0.0 }
0x1570   :  { %v4071_v7 = vsel %vm227_vm1, %v4069_v19, 0.0 }
0x1571   :  { %4072 = vadd.xlane.f32.xlu0 %v4071_v7 }
0x1575   :  { %4075 = vadd.xlane.f32.xlu0 %v4074_v21 }
0x15fe   :  { %v4073_v29 = vpop.xlane.xlu0 %4072 }
0x15ff   :  { %v4077_v31 = vmul.f32 0.03125, %v4073_v29 }
0x1601   :  { %v4079_v32 = vadd.f32 1e-05, %v4077_v31 }
0x1602   :  { %v4076_v33 = vpop.xlane.xlu0 %4075 }
0x1603   :  { %5271 = vrsqrt.f32 %v4079_v32  ;;  %v4078_v35 = vmul.f32 0.03125, %v4076_v33 }
0x1605   :  { %v4080_v36 = vadd.f32 1e-05, %v4078_v35 }
0x1607   :  { %5273 = vrsqrt.f32 %v4080_v36 }
0x160d   :  { %v5272_v37 = vpop.eup %5271 }
0x160e   :  { %v4083_v39 = vmul.f32 %v5272_v37, %v4067_v6  ;;  %v4544_v6 = vld [vmem:[%s6177_s18 + $0x1] ss:$0 sm:$0xff] }
0x1610   :  { %v4091_v41 = vmul.f32 %v4525_v38, %v4083_v39 }
0x1611   :  { %v5274_v42 = vpop.eup %5273 }
0x1612   :  { %v4084_v22 = vmul.f32 %v5274_v42, %v4068_v18  ;;  %v4099_v43 = vadd.f32 %v4526_v40, %v4091_v41 }
0x1614   :  { %v4092_v44 = vmul.f32 %v4525_v38, %v4084_v22  ;;  %5005 = vmatprep.mubr.msk.f32.mxu1 %vm227_vm1, %v4099_v43  ;;  %v4547_v43 = vld [vmem:[%s6178_s19] ss:$0 sm:$0xff] }
0x1616   :  { %v4100_v45 = vadd.f32 %v4526_v40, %v4092_v44 }
0x1618   :  { %5006 = vmatmul.mubr.msk.f32.vlgmr.msra.gmra.mrb[52].mxu1 %vm227_vm1, %v4100_v45 }
0x16eb   :  { %v5007_v63 = vpop.f32.mrb[52].mxu1 }
0x16ec   :  { %v4192_v0 = vadd.f32 %v5007_v63, %v4532_v62  ;;  %v4186_v1 = vpop.f32.mrb[53].mxu1 }
0x16ed   :  { %v4187_v50 = vadd.f32 %v4532_v62, %v4186_v1 }
0x16ee   :  { %v4196_v2 = vmul.f32 %v4192_v0, %v4192_v0 }
0x16ef   :  { %v4195_v51 = vmul.f32 %v4187_v50, %v4187_v50 }
0x16f0   :  { %v4198_v3 = vmul.f32 %v4196_v2, %v4192_v0 }
0x16f1   :  { %v4197_v4 = vmul.f32 %v4195_v51, %v4187_v50 }
0x16f2   :  { %v4200_v5 = vmul.f32 0.044715, %v4198_v3 }
0x16f3   :  { %v4199_v8 = vmul.f32 0.044715, %v4197_v4 }
0x16f4   :  { %v4202_v9 = vadd.f32 %v4200_v5, %v4192_v0 }
0x16f5   :  { %v4201_v10 = vadd.f32 %v4199_v8, %v4187_v50 }
0x16f6   :  { %v4204_v11 = vmul.f32 0.7978846, %v4202_v9 }
0x16f7   :  { %v4203_v12 = vmul.f32 0.7978846, %v4201_v10 }
0x16f8   :  { %5275 = vtanh.f32 %v4204_v11  ;;  %v4549_v11 = vld [vmem:[%s6180_s21] ss:$0 sm:$0xff] }
0x16f9   :  { %5277 = vtanh.f32 %v4203_v12 }
0x1702   :  { %v5276_v13 = vpop.eup %5275 }
0x1703   :  { %v5278_v52 = vpop.eup %5277  ;;  %v4208_v56 = vadd.f32 1.0, %v5276_v13 }
0x1704   :  { %v4207_v15 = vadd.f32 1.0, %v5278_v52 }
0x1705   :  { %v4210_v16 = vmul.f32 0.5, %v4208_v56  ;;  %v4550_v56 = vld [vmem:[%s6181_s22] ss:$0 sm:$0xff] }
0x1706   :  { %v4209_v30 = vmul.f32 0.5, %v4207_v15 }
0x1707   :  { %v4212_v18 = vmul.f32 %v4210_v16, %v4192_v0 }
0x1708   :  { %v4211_v17 = vmul.f32 %v4209_v30, %v4187_v50 }
0x170a   :  { %5024 = vmatprep.mubr.msk.f32.mxu0 %vm2387_vm5, %v4211_v17 }
0x170b   :  { %5025 = vmatmul.mubr.msk.f32.vlgmr.msra.gmra.mrb[34].mxu0 %vm2387_vm5, %v4212_v18 }
0x17de   :  { %v5026_v19 = vpop.f32.mrb[34].mxu0 }
0x17df   :  { %v4308_v7 = vadd.f32 %v5026_v19, %v4544_v6  ;;  %v4302_v20 = vpop.f32.mrb[35].mxu0 }
0x17e0   :  { %v4303_v21 = vadd.f32 %v4544_v6, %v4302_v20 }
0x17e1   :  { %v4312_v23 = vadd.f32 %v4308_v7, %v6057_v14 }
0x17e2   :  { %v4311_v24 = vadd.f32 %v4303_v21, %v6060_v59 }
0x17e3   :  { %v4318_v25 = vsel %vm227_vm1, %v4312_v23, 0.0 }
0x17e4   :  { %4319 = vadd.xlane.f32.xlu0 %v4318_v25  ;;  %v4315_v26 = vsel %vm227_vm1, %v4311_v24, 0.0 }
0x17e5   :  { %4316 = vadd.xlane.f32.xlu1 %v4315_v26 }
0x1871   :  { %v4320_v27 = vpop.xlane.xlu0 %4319 }
0x1872   :  { %v4322_v28 = vmul.f32 0.03125, %v4320_v27  ;;  %v4317_v29 = vpop.xlane.xlu1 %4316 }
0x1873   :  { %v4321_v31 = vmul.f32 0.03125, %v4317_v29 }
0x1874   :  { %v4324_v32 = vsub.f32 %v4312_v23, %v4322_v28 }
0x1875   :  { %v4323_v33 = vsub.f32 %v4311_v24, %v4321_v31 }
0x1876   :  { %v4326_v35 = vmul.f32 %v4324_v32, %v4324_v32 }
0x1877   :  { %v4325_v36 = vmul.f32 %v4323_v33, %v4323_v33 }
0x1878   :  { %v4330_v37 = vsel %vm227_vm1, %v4326_v35, 0.0 }
0x1879   :  { %4331 = vadd.xlane.f32.xlu0 %v4330_v37  ;;  %v4327_v14 = vsel %vm227_vm1, %v4325_v36, 0.0 }
0x187a   :  { %4328 = vadd.xlane.f32.xlu1 %v4327_v14 }
0x1906   :  { %v4332_v59 = vpop.xlane.xlu0 %4331 }
0x1907   :  { %v4334_v38 = vmul.f32 0.03125, %v4332_v59  ;;  %v4329_v39 = vpop.xlane.xlu1 %4328 }
0x1908   :  { %v4333_v40 = vmul.f32 0.03125, %v4329_v39 }
0x1909   :  { %v4336_v41 = vadd.f32 1e-05, %v4334_v38 }
0x190a   :  { %v4335_v42 = vadd.f32 1e-05, %v4333_v40 }
0x190b   :  { %5279 = vrsqrt.f32 %v4336_v41 }
0x190c   :  { %5281 = vrsqrt.f32 %v4335_v42 }
0x1915   :  { %v5280_v22 = vpop.eup %5279 }
0x1916   :  { %v5282_v44 = vpop.eup %5281  ;;  %v4340_v45 = vmul.f32 %v5280_v22, %v4324_v32 }
0x1917   :  { %v4339_v47 = vmul.f32 %v5282_v44, %v4323_v33 }
0x1918   :  { %v4348_v48 = vmul.f32 %v4547_v43, %v4340_v45 }
0x1919   :  { %v4347_v49 = vmul.f32 %v4547_v43, %v4339_v47 }
0x191a   :  { %v4356_v53 = vadd.f32 %v4548_v46, %v4348_v48 }
0x191b   :  { %v4355_v54 = vadd.f32 %v4548_v46, %v4347_v49 }
0x191c   :  { %v4362_v55 = vsel %vm227_vm1, %v4356_v53, 0.0 }
0x191d   :  { %4363 = vadd.xlane.f32.xlu0 %v4362_v55  ;;  %v4359_v57 = vsel %vm227_vm1, %v4355_v54, 0.0 }
0x191e   :  { %4360 = vadd.xlane.f32.xlu1 %v4359_v57 }
0x19aa   :  { %v4364_v58 = vpop.xlane.xlu0 %4363 }
0x19ab   :  { %v4366_v34 = vmul.f32 0.03125, %v4364_v58  ;;  %v4361_v60 = vpop.xlane.xlu1 %4360 }
0x19ac   :  { %v4365_v61 = vmul.f32 0.03125, %v4361_v60 }
0x19ad   :  { %v4368_v62 = vsub.f32 %v4356_v53, %v4366_v34 }
0x19ae   :  { %v4367_v63 = vsub.f32 %v4355_v54, %v4365_v61 }
0x19af   :  { %v4370_v0 = vmul.f32 %v4368_v62, %v4368_v62 }
0x19b0   :  { %v4369_v1 = vmul.f32 %v4367_v63, %v4367_v63 }
0x19b1   :  { %v4374_v50 = vsel %vm227_vm1, %v4370_v0, 0.0 }
0x19b2   :  { %4375 = vadd.xlane.f32.xlu0 %v4374_v50  ;;  %v4371_v2 = vsel %vm227_vm1, %v4369_v1, 0.0 }
0x19b3   :  { %4372 = vadd.xlane.f32.xlu1 %v4371_v2 }
0x1a3f   :  { %v4376_v51 = vpop.xlane.xlu0 %4375 }
0x1a40   :  { %v4378_v3 = vmul.f32 0.03125, %v4376_v51  ;;  %v4373_v4 = vpop.xlane.xlu1 %4372 }
0x1a41   :  { %v4377_v5 = vmul.f32 0.03125, %v4373_v4 }
0x1a42   :  { %v4380_v8 = vadd.f32 1e-05, %v4378_v3 }
0x1a43   :  { %v4379_v9 = vadd.f32 1e-05, %v4377_v5 }
0x1a44   :  { %5283 = vrsqrt.f32 %v4380_v8 }
0x1a45   :  { %5285 = vrsqrt.f32 %v4379_v9 }
0x1a4e   :  { %v5284_v10 = vpop.eup %5283 }
0x1a4f   :  { %v5286_v12 = vpop.eup %5285  ;;  %v4384_v13 = vmul.f32 %v5284_v10, %v4368_v62 }
0x1a50   :  { %v4383_v52 = vmul.f32 %v5286_v12, %v4367_v63 }
0x1a51   :  { %v4392_v15 = vmul.f32 %v4549_v11, %v4384_v13 }
0x1a52   :  { %v4391_v16 = vmul.f32 %v4549_v11, %v4383_v52 }
0x1a53   :  { %v4400_v30 = vadd.f32 %v4550_v56, %v4392_v15 }
0x1a54   :  { %v4399_v17 = vadd.f32 %v4550_v56, %v4391_v16 }
0x1a55   :  { %4402 = vst.msk [vmem:[#allocation2 + $0x8] sm:$0xff] %vm227_vm1, %v4400_v30 }
0x1a56   :  { %4401 = vst.msk [vmem:[#allocation2] sm:$0xff] %vm227_vm1, %v4399_v17 }
0x1a57   :  { %5298 = shalt.err (!%p5295_p4)
}
0x1a58   :  { %s5299_s14 = scalar_lea.hbm %s6182_s23, 256 }
0x1a59   :  { %p5300_p5 = scmp.ne.s32.totalorder %s6182_s23, %s5299_s14  ;;  %p5303_p6 = scmp.lt.u32.totalorder %s5299_s14, %s6182_s23 }
0x1a5b   :  { %p5305_p7 = pnand %p5303_p6, %p5300_p5 }
0x1a5d   :  { %5308 = shalt.err (!%p5305_p7)
}
0x1a5e   :  { %s5322_s4 = smov 128  }
0x1a5f   :  { %4414 = dma.vmem_to_hbm [thread:$0]  %s4409_s13, 256, %s6182_s23, [#allocation3], %s5322_s4, %s5322_s4, %s5318_s7  }
0x1a60   :  { %5309 = dma.done.wait [#allocation3], 256  }
0x1a61   :  { %5310 = vsyncadd [#allocation3], 4294967040 }
0x1a62   :  { %4418 = vsyncpa [#allocation3], 1 }

</bundles_post_ra>
